<compile_context>
chip_gen: v7x
topology: tpu7x:2x2x1
jax: 0.10.0
libtpu: 0.0.40
codegen_flags: <defaults>
</compile_context>

<pallas_src>
import functools

import jax
import jax.numpy as jnp
from jax import lax
from jax.experimental import pallas as pl
from jax.experimental.pallas import tpu as pltpu


def _pc_rnn_hc_m_fwd_kernel(x_ref, c_init_ref, h_init_ref,
                            w_pd_ref, w_cd_ref, w_cd_t_ref,
                            w_fd_ref, w_fd_t_ref,
                            w_o_ref, w_o_t_ref,
                            b_r_ref, b_o_ref,
                            err_ref,
                            *, tau_h, alpha_x, alpha_h, seq_len, unroll):
    # Hoist all loop-invariant loads / scalar folds out of the time loop.
    w_pd = w_pd_ref[...]        # (S, F)
    w_cd = w_cd_ref[...]        # (C, F)
    w_cd_t = w_cd_t_ref[...]    # (F, C)
    w_fd = w_fd_ref[...]        # (S, F)
    w_fd_t = w_fd_t_ref[...]    # (F, S)
    w_o = w_o_ref[...]          # (O, S)
    w_o_t = w_o_t_ref[...]      # (S, O)

    leak = 1.0 - 1.0 / tau_h
    gain = 1.0 / tau_h
    b_r_scaled = gain * b_r_ref[...]    # (B, S), pre-broadcast in wrapper
    b_o = b_o_ref[...]                  # (B, O), pre-broadcast in wrapper

    def step(t, carry):
        h_post, c = carry                                                   # (B,S), (B,C)
        th = jnp.tanh(h_post)                                               # (B, S)
        p = jnp.dot(th, w_pd, preferred_element_type=jnp.float32)           # (B, F)
        q = jnp.dot(c, w_cd, preferred_element_type=jnp.float32)            # (B, F)
        rec = jnp.dot(p * q, w_fd_t, preferred_element_type=jnp.float32)    # (B, S)
        h_prior = leak * h_post + gain * rec + b_r_scaled                   # (B, S)
        thp = jnp.tanh(h_prior)
        x_pred = jnp.dot(thp, w_o_t, preferred_element_type=jnp.float32) + b_o  # (B, O)
        error = x_pred - x_ref[t]                                           # (B, O)
        err_ref[t] = error

        if alpha_x > 0:
            # Inference (backward) pass of the predictive-coding step.
            corr = jnp.dot(error, w_o, preferred_element_type=jnp.float32)  # (B, S)
            error_h = alpha_x * (1.0 - thp * thp) * corr                    # = h_prior - h_post
            h_post_new = h_prior - error_h
            e_fd = jnp.dot(error_h, w_fd, preferred_element_type=jnp.float32)  # (B, F)
            c_new = c - alpha_h * jnp.dot(p * e_fd, w_cd_t,
                                          preferred_element_type=jnp.float32)  # (B, C)
            return h_post_new, c_new
        return h_prior, c

    lax.fori_loop(0, seq_len, step, (h_init_ref[...], c_init_ref[...]),
                  unroll=unroll)


def pc_rnn_hc_m_forward(x, c_init, h_init, w_pd, w_cd, w_fd, w_o, b_r, b_o,
                        *, tau_h, alpha_x, alpha_h):
    """Pallas implementation of PC_RNN_HC_M.forward (returns `errors`)."""
    seq_len, batch, output_dim = x.shape
    states_dim = h_init.shape[1]

    # One-time wrapper-side layout work (removed from the per-step loop):
    w_cd_t = jnp.asarray(w_cd.T, jnp.float32)
    w_fd_t = jnp.asarray(w_fd.T, jnp.float32)
    w_o_t = jnp.asarray(w_o.T, jnp.float32)
    b_r_b = jnp.broadcast_to(b_r[None, :], (batch, states_dim)).astype(jnp.float32)
    b_o_b = jnp.broadcast_to(b_o[None, :], (batch, output_dim)).astype(jnp.float32)

    unroll = bool(seq_len <= 32)
    kernel = functools.partial(
        _pc_rnn_hc_m_fwd_kernel,
        tau_h=float(tau_h), alpha_x=float(alpha_x), alpha_h=float(alpha_h),
        seq_len=seq_len, unroll=unroll)

    vmem_spec = pl.BlockSpec(memory_space=pltpu.MemorySpace.VMEM)
    errors = pl.pallas_call(
        kernel,
        out_shape=jax.ShapeDtypeStruct((seq_len, batch, output_dim), jnp.float32),
        in_specs=[vmem_spec] * 12,
        out_specs=vmem_spec,
    )(x, c_init, h_init, w_pd, w_cd, w_cd_t, w_fd, w_fd_t, w_o, w_o_t,
      b_r_b, b_o_b)
    return errors


def pc_rnn_hc_m_forward_ref(x, c_init, h_init, w_pd, w_cd, w_fd, w_o, b_r, b_o,
                            *, tau_h, alpha_x, alpha_h):
    """Pure-JAX reference mirroring the PyTorch loop."""
    def step(carry, x_t):
        h_post, c = carry
        th = jnp.tanh(h_post)
        p = th @ w_pd
        q = c @ w_cd
        h_prior = (1.0 - 1.0 / tau_h) * h_post + (1.0 / tau_h) * (
            (p * q) @ w_fd.T + b_r[None, :])
        thp = jnp.tanh(h_prior)
        x_pred = thp @ w_o.T + b_o[None, :]
        error = x_pred - x_t
        if alpha_x > 0:
            h_post_new = h_prior - alpha_x * (1.0 - thp ** 2) * (error @ w_o)
            error_h = h_prior - h_post_new
            c_new = c - alpha_h * ((p * (error_h @ w_fd)) @ w_cd.T)
            return (h_post_new, c_new), error
        return (h_prior, c), error

    _, errors = lax.scan(step, (h_init, c_init), x)
    return errors


if __name__ == "__main__":
    # Small hyperparameters consistent with the module's forward semantics.
    causes_dim = 4
    states_dim = 32
    output_dim = 4
    factor_dim = 8
    tau_h = 10.0
    alpha_x = 0.1
    alpha_h = 0.05

    seq_len = 8
    batch = 2

    key = jax.random.PRNGKey(0)
    (k_wo, k_bo, k_wpd, k_wfd, k_wcd, k_br, k_x, k_c, k_h) = jax.random.split(key, 9)

    # Deterministic parameter init matching __init__ shapes/scales.
    w_o = jax.random.normal(k_wo, (output_dim, states_dim), jnp.float32) / states_dim
    b_o = jax.random.normal(k_bo, (output_dim,), jnp.float32) / 10.0
    w_pd = jax.random.normal(k_wpd, (states_dim, factor_dim), jnp.float32) / jnp.sqrt(
        float(factor_dim))
    w_fd = jax.random.normal(k_wfd, (states_dim, factor_dim), jnp.float32) / jnp.sqrt(
        float(factor_dim))
    w_cd = jax.nn.softmax(0.5 * jax.random.normal(k_wcd, (causes_dim, factor_dim),
                                                  jnp.float32), axis=1) * factor_dim
    b_r = jax.random.normal(k_br, (states_dim,), jnp.float32) / 10.0

    # Example inputs.
    x = jax.random.normal(k_x, (seq_len, batch, output_dim), jnp.float32)
    c_init = jax.random.normal(k_c, (batch, causes_dim), jnp.float32)
    h_init = jax.random.normal(k_h, (batch, states_dim), jnp.float32)

    errors = pc_rnn_hc_m_forward(x, c_init, h_init, w_pd, w_cd, w_fd, w_o, b_r, b_o,
                                 tau_h=tau_h, alpha_x=alpha_x, alpha_h=alpha_h)
    errors = jax.block_until_ready(errors)

    errors_ref = pc_rnn_hc_m_forward_ref(x, c_init, h_init, w_pd, w_cd, w_fd, w_o,
                                         b_r, b_o, tau_h=tau_h, alpha_x=alpha_x,
                                         alpha_h=alpha_h)
    assert errors.shape == (seq_len, batch, output_dim)
    assert jnp.allclose(errors, errors_ref, atol=2e-5, rtol=1e-4)

    print("KERNEL_OK")
</pallas_src>

<mosaic_0001>
module attributes {stable_mosaic.version = 11 : i64} {
  func.func @_pc_rnn_hc_m_fwd_kernel(%arg0: memref<8x2x4xf32, #tpu.memory_space<vmem>>, %arg1: memref<2x4xf32, #tpu.memory_space<vmem>>, %arg2: memref<2x32xf32, #tpu.memory_space<vmem>>, %arg3: memref<32x8xf32, #tpu.memory_space<vmem>>, %arg4: memref<4x8xf32, #tpu.memory_space<vmem>>, %arg5: memref<8x4xf32, #tpu.memory_space<vmem>>, %arg6: memref<32x8xf32, #tpu.memory_space<vmem>>, %arg7: memref<8x32xf32, #tpu.memory_space<vmem>>, %arg8: memref<4x32xf32, #tpu.memory_space<vmem>>, %arg9: memref<32x4xf32, #tpu.memory_space<vmem>>, %arg10: memref<2x32xf32, #tpu.memory_space<vmem>>, %arg11: memref<2x4xf32, #tpu.memory_space<vmem>>, %arg12: memref<8x2x4xf32, #tpu.memory_space<vmem>>) attributes {dimension_semantics = [], scalar_prefetch = 0 : i64, scratch_operands = 0 : i64, tpu.core_type = #tpu.core_type<tc>} {
    %c0 = arith.constant 0 : index
    %c0_0 = arith.constant 0 : index
    %0 = vector.load %arg3[%c0, %c0_0] : memref<32x8xf32, #tpu.memory_space<vmem>>, vector<32x8xf32>
    %c0_1 = arith.constant 0 : index
    %c0_2 = arith.constant 0 : index
    %1 = vector.load %arg4[%c0_1, %c0_2] : memref<4x8xf32, #tpu.memory_space<vmem>>, vector<4x8xf32>
    %c0_3 = arith.constant 0 : index
    %c0_4 = arith.constant 0 : index
    %2 = vector.load %arg5[%c0_3, %c0_4] : memref<8x4xf32, #tpu.memory_space<vmem>>, vector<8x4xf32>
    %c0_5 = arith.constant 0 : index
    %c0_6 = arith.constant 0 : index
    %3 = vector.load %arg6[%c0_5, %c0_6] : memref<32x8xf32, #tpu.memory_space<vmem>>, vector<32x8xf32>
    %c0_7 = arith.constant 0 : index
    %c0_8 = arith.constant 0 : index
    %4 = vector.load %arg7[%c0_7, %c0_8] : memref<8x32xf32, #tpu.memory_space<vmem>>, vector<8x32xf32>
    %c0_9 = arith.constant 0 : index
    %c0_10 = arith.constant 0 : index
    %5 = vector.load %arg8[%c0_9, %c0_10] : memref<4x32xf32, #tpu.memory_space<vmem>>, vector<4x32xf32>
    %c0_11 = arith.constant 0 : index
    %c0_12 = arith.constant 0 : index
    %6 = vector.load %arg9[%c0_11, %c0_12] : memref<32x4xf32, #tpu.memory_space<vmem>>, vector<32x4xf32>
    %c0_13 = arith.constant 0 : index
    %c0_14 = arith.constant 0 : index
    %7 = vector.load %arg10[%c0_13, %c0_14] : memref<2x32xf32, #tpu.memory_space<vmem>>, vector<2x32xf32>
    %cst = arith.constant 1.000000e-01 : f32
    %8 = vector.broadcast %cst : f32 to vector<2x32xf32>
    %9 = arith.mulf %8, %7 : vector<2x32xf32>
    %c0_15 = arith.constant 0 : index
    %c0_16 = arith.constant 0 : index
    %10 = vector.load %arg11[%c0_15, %c0_16] : memref<2x4xf32, #tpu.memory_space<vmem>>, vector<2x4xf32>
    %c0_17 = arith.constant 0 : index
    %c0_18 = arith.constant 0 : index
    %11 = vector.load %arg2[%c0_17, %c0_18] : memref<2x32xf32, #tpu.memory_space<vmem>>, vector<2x32xf32>
    %c0_19 = arith.constant 0 : index
    %c0_20 = arith.constant 0 : index
    %12 = vector.load %arg1[%c0_19, %c0_20] : memref<2x4xf32, #tpu.memory_space<vmem>>, vector<2x4xf32>
    %c0_i32 = arith.constant 0 : i32
    %13 = math.tanh %11 : vector<2x32xf32>
    %cst_21 = arith.constant dense<0.000000e+00> : vector<2x8xf32>
    %14 = tpu.matmul %13, %0, %cst_21 {dimension_numbers = #tpu.dot_dimension_numbers<[1], [0], [0], [1], [0, 0, 1, 1], [], []>} : vector<2x32xf32>, vector<32x8xf32>, vector<2x8xf32> -> vector<2x8xf32>
    %cst_22 = arith.constant dense<0.000000e+00> : vector<2x8xf32>
    %15 = tpu.matmul %12, %1, %cst_22 {dimension_numbers = #tpu.dot_dimension_numbers<[1], [0], [0], [1], [0, 0, 1, 1], [], []>} : vector<2x4xf32>, vector<4x8xf32>, vector<2x8xf32> -> vector<2x8xf32>
    %16 = arith.mulf %14, %15 : vector<2x8xf32>
    %cst_23 = arith.constant dense<0.000000e+00> : vector<2x32xf32>
    %17 = tpu.matmul %16, %4, %cst_23 {dimension_numbers = #tpu.dot_dimension_numbers<[1], [0], [0], [1], [0, 0, 1, 1], [], []>} : vector<2x8xf32>, vector<8x32xf32>, vector<2x32xf32> -> vector<2x32xf32>
    %cst_24 = arith.constant 0.899999976 : f32
    %18 = vector.broadcast %cst_24 : f32 to vector<2x32xf32>
    %19 = arith.mulf %18, %11 : vector<2x32xf32>
    %cst_25 = arith.constant 1.000000e-01 : f32
    %20 = vector.broadcast %cst_25 : f32 to vector<2x32xf32>
    %21 = arith.mulf %20, %17 : vector<2x32xf32>
    %22 = arith.addf %19, %21 : vector<2x32xf32>
    %23 = arith.addf %22, %9 : vector<2x32xf32>
    %24 = math.tanh %23 : vector<2x32xf32>
    %cst_26 = arith.constant dense<0.000000e+00> : vector<2x4xf32>
    %25 = tpu.matmul %24, %6, %cst_26 {dimension_numbers = #tpu.dot_dimension_numbers<[1], [0], [0], [1], [0, 0, 1, 1], [], []>} : vector<2x32xf32>, vector<32x4xf32>, vector<2x4xf32> -> vector<2x4xf32>
    %26 = arith.addf %25, %10 : vector<2x4xf32>
    %27 = arith.index_cast %c0_i32 : i32 to index
    %c0_27 = arith.constant 0 : index
    %c0_28 = arith.constant 0 : index
    %28 = vector.load %arg0[%27, %c0_27, %c0_28] : memref<8x2x4xf32, #tpu.memory_space<vmem>>, vector<1x2x4xf32>
    %29 = vector.shape_cast %28 : vector<1x2x4xf32> to vector<2x4xf32>
    %30 = arith.subf %26, %29 : vector<2x4xf32>
    %31 = arith.index_cast %c0_i32 : i32 to index
    %c0_29 = arith.constant 0 : index
    %c0_30 = arith.constant 0 : index
    %32 = vector.load %arg12[%31, %c0_29, %c0_30] : memref<8x2x4xf32, #tpu.memory_space<vmem>>, vector<1x2x4xf32>
    %33 = vector.shape_cast %32 : vector<1x2x4xf32> to vector<2x4xf32>
    %34 = vector.shape_cast %30 : vector<2x4xf32> to vector<1x2x4xf32>
    tpu.vector_store %arg12[%31, %c0_29, %c0_30], %34 {strides = array<i32>} : memref<8x2x4xf32, #tpu.memory_space<vmem>>, vector<1x2x4xf32>,
    %cst_31 = arith.constant dense<0.000000e+00> : vector<2x32xf32>
    %35 = tpu.matmul %30, %5, %cst_31 {dimension_numbers = #tpu.dot_dimension_numbers<[1], [0], [0], [1], [0, 0, 1, 1], [], []>} : vector<2x4xf32>, vector<4x32xf32>, vector<2x32xf32> -> vector<2x32xf32>
    %36 = arith.mulf %24, %24 : vector<2x32xf32>
    %cst_32 = arith.constant 1.000000e+00 : f32
    %37 = vector.broadcast %cst_32 : f32 to vector<2x32xf32>
    %38 = arith.subf %37, %36 : vector<2x32xf32>
    %cst_33 = arith.constant 1.000000e-01 : f32
    %39 = vector.broadcast %cst_33 : f32 to vector<2x32xf32>
    %40 = arith.mulf %39, %38 : vector<2x32xf32>
    %41 = arith.mulf %40, %35 : vector<2x32xf32>
    %42 = arith.subf %23, %41 : vector<2x32xf32>
    %cst_34 = arith.constant dense<0.000000e+00> : vector<2x8xf32>
    %43 = tpu.matmul %41, %3, %cst_34 {dimension_numbers = #tpu.dot_dimension_numbers<[1], [0], [0], [1], [0, 0, 1, 1], [], []>} : vector<2x32xf32>, vector<32x8xf32>, vector<2x8xf32> -> vector<2x8xf32>
    %44 = arith.mulf %14, %43 : vector<2x8xf32>
    %cst_35 = arith.constant dense<0.000000e+00> : vector<2x4xf32>
    %45 = tpu.matmul %44, %2, %cst_35 {dimension_numbers = #tpu.dot_dimension_numbers<[1], [0], [0], [1], [0, 0, 1, 1], [], []>} : vector<2x8xf32>, vector<8x4xf32>, vector<2x4xf32> -> vector<2x4xf32>
    %cst_36 = arith.constant 5.000000e-02 : f32
    %46 = vector.broadcast %cst_36 : f32 to vector<2x4xf32>
    %47 = arith.mulf %46, %45 : vector<2x4xf32>
    %48 = arith.subf %12, %47 : vector<2x4xf32>
    %c1_i32 = arith.constant 1 : i32
    %49 = math.tanh %42 : vector<2x32xf32>
    %cst_37 = arith.constant dense<0.000000e+00> : vector<2x8xf32>
    %50 = tpu.matmul %49, %0, %cst_37 {dimension_numbers = #tpu.dot_dimension_numbers<[1], [0], [0], [1], [0, 0, 1, 1], [], []>} : vector<2x32xf32>, vector<32x8xf32>, vector<2x8xf32> -> vector<2x8xf32>
    %cst_38 = arith.constant dense<0.000000e+00> : vector<2x8xf32>
    %51 = tpu.matmul %48, %1, %cst_38 {dimension_numbers = #tpu.dot_dimension_numbers<[1], [0], [0], [1], [0, 0, 1, 1], [], []>} : vector<2x4xf32>, vector<4x8xf32>, vector<2x8xf32> -> vector<2x8xf32>
    %52 = arith.mulf %50, %51 : vector<2x8xf32>
    %cst_39 = arith.constant dense<0.000000e+00> : vector<2x32xf32>
    %53 = tpu.matmul %52, %4, %cst_39 {dimension_numbers = #tpu.dot_dimension_numbers<[1], [0], [0], [1], [0, 0, 1, 1], [], []>} : vector<2x8xf32>, vector<8x32xf32>, vector<2x32xf32> -> vector<2x32xf32>
    %cst_40 = arith.constant 0.899999976 : f32
    %54 = vector.broadcast %cst_40 : f32 to vector<2x32xf32>
    %55 = arith.mulf %54, %42 : vector<2x32xf32>
    %cst_41 = arith.constant 1.000000e-01 : f32
    %56 = vector.broadcast %cst_41 : f32 to vector<2x32xf32>
    %57 = arith.mulf %56, %53 : vector<2x32xf32>
    %58 = arith.addf %55, %57 : vector<2x32xf32>
    %59 = arith.addf %58, %9 : vector<2x32xf32>
    %60 = math.tanh %59 : vector<2x32xf32>
    %cst_42 = arith.constant dense<0.000000e+00> : vector<2x4xf32>
    %61 = tpu.matmul %60, %6, %cst_42 {dimension_numbers = #tpu.dot_dimension_numbers<[1], [0], [0], [1], [0, 0, 1, 1], [], []>} : vector<2x32xf32>, vector<32x4xf32>, vector<2x4xf32> -> vector<2x4xf32>
    %62 = arith.addf %61, %10 : vector<2x4xf32>
    %63 = arith.index_cast %c1_i32 : i32 to index
    %c0_43 = arith.constant 0 : index
    %c0_44 = arith.constant 0 : index
    %64 = vector.load %arg0[%63, %c0_43, %c0_44] : memref<8x2x4xf32, #tpu.memory_space<vmem>>, vector<1x2x4xf32>
    %65 = vector.shape_cast %64 : vector<1x2x4xf32> to vector<2x4xf32>
    %66 = arith.subf %62, %65 : vector<2x4xf32>
    %67 = arith.index_cast %c1_i32 : i32 to index
    %c0_45 = arith.constant 0 : index
    %c0_46 = arith.constant 0 : index
    %68 = vector.load %arg12[%67, %c0_45, %c0_46] : memref<8x2x4xf32, #tpu.memory_space<vmem>>, vector<1x2x4xf32>
    %69 = vector.shape_cast %68 : vector<1x2x4xf32> to vector<2x4xf32>
    %70 = vector.shape_cast %66 : vector<2x4xf32> to vector<1x2x4xf32>
    tpu.vector_store %arg12[%67, %c0_45, %c0_46], %70 {strides = array<i32>} : memref<8x2x4xf32, #tpu.memory_space<vmem>>, vector<1x2x4xf32>,
    %cst_47 = arith.constant dense<0.000000e+00> : vector<2x32xf32>
    %71 = tpu.matmul %66, %5, %cst_47 {dimension_numbers = #tpu.dot_dimension_numbers<[1], [0], [0], [1], [0, 0, 1, 1], [], []>} : vector<2x4xf32>, vector<4x32xf32>, vector<2x32xf32> -> vector<2x32xf32>
    %72 = arith.mulf %60, %60 : vector<2x32xf32>
    %cst_48 = arith.constant 1.000000e+00 : f32
    %73 = vector.broadcast %cst_48 : f32 to vector<2x32xf32>
    %74 = arith.subf %73, %72 : vector<2x32xf32>
    %cst_49 = arith.constant 1.000000e-01 : f32
    %75 = vector.broadcast %cst_49 : f32 to vector<2x32xf32>
    %76 = arith.mulf %75, %74 : vector<2x32xf32>
    %77 = arith.mulf %76, %71 : vector<2x32xf32>
    %78 = arith.subf %59, %77 : vector<2x32xf32>
    %cst_50 = arith.constant dense<0.000000e+00> : vector<2x8xf32>
    %79 = tpu.matmul %77, %3, %cst_50 {dimension_numbers = #tpu.dot_dimension_numbers<[1], [0], [0], [1], [0, 0, 1, 1], [], []>} : vector<2x32xf32>, vector<32x8xf32>, vector<2x8xf32> -> vector<2x8xf32>
    %80 = arith.mulf %50, %79 : vector<2x8xf32>
    %cst_51 = arith.constant dense<0.000000e+00> : vector<2x4xf32>
    %81 = tpu.matmul %80, %2, %cst_51 {dimension_numbers = #tpu.dot_dimension_numbers<[1], [0], [0], [1], [0, 0, 1, 1], [], []>} : vector<2x8xf32>, vector<8x4xf32>, vector<2x4xf32> -> vector<2x4xf32>
    %cst_52 = arith.constant 5.000000e-02 : f32
    %82 = vector.broadcast %cst_52 : f32 to vector<2x4xf32>
    %83 = arith.mulf %82, %81 : vector<2x4xf32>
    %84 = arith.subf %48, %83 : vector<2x4xf32>
    %c2_i32 = arith.constant 2 : i32
    %85 = math.tanh %78 : vector<2x32xf32>
    %cst_53 = arith.constant dense<0.000000e+00> : vector<2x8xf32>
    %86 = tpu.matmul %85, %0, %cst_53 {dimension_numbers = #tpu.dot_dimension_numbers<[1], [0], [0], [1], [0, 0, 1, 1], [], []>} : vector<2x32xf32>, vector<32x8xf32>, vector<2x8xf32> -> vector<2x8xf32>
    %cst_54 = arith.constant dense<0.000000e+00> : vector<2x8xf32>
    %87 = tpu.matmul %84, %1, %cst_54 {dimension_numbers = #tpu.dot_dimension_numbers<[1], [0], [0], [1], [0, 0, 1, 1], [], []>} : vector<2x4xf32>, vector<4x8xf32>, vector<2x8xf32> -> vector<2x8xf32>
    %88 = arith.mulf %86, %87 : vector<2x8xf32>
    %cst_55 = arith.constant dense<0.000000e+00> : vector<2x32xf32>
    %89 = tpu.matmul %88, %4, %cst_55 {dimension_numbers = #tpu.dot_dimension_numbers<[1], [0], [0], [1], [0, 0, 1, 1], [], []>} : vector<2x8xf32>, vector<8x32xf32>, vector<2x32xf32> -> vector<2x32xf32>
    %cst_56 = arith.constant 0.899999976 : f32
    %90 = vector.broadcast %cst_56 : f32 to vector<2x32xf32>
    %91 = arith.mulf %90, %78 : vector<2x32xf32>
    %cst_57 = arith.constant 1.000000e-01 : f32
    %92 = vector.broadcast %cst_57 : f32 to vector<2x32xf32>
    %93 = arith.mulf %92, %89 : vector<2x32xf32>
    %94 = arith.addf %91, %93 : vector<2x32xf32>
    %95 = arith.addf %94, %9 : vector<2x32xf32>
    %96 = math.tanh %95 : vector<2x32xf32>
    %cst_58 = arith.constant dense<0.000000e+00> : vector<2x4xf32>
    %97 = tpu.matmul %96, %6, %cst_58 {dimension_numbers = #tpu.dot_dimension_numbers<[1], [0], [0], [1], [0, 0, 1, 1], [], []>} : vector<2x32xf32>, vector<32x4xf32>, vector<2x4xf32> -> vector<2x4xf32>
    %98 = arith.addf %97, %10 : vector<2x4xf32>
    %99 = arith.index_cast %c2_i32 : i32 to index
    %c0_59 = arith.constant 0 : index
    %c0_60 = arith.constant 0 : index
    %100 = vector.load %arg0[%99, %c0_59, %c0_60] : memref<8x2x4xf32, #tpu.memory_space<vmem>>, vector<1x2x4xf32>
    %101 = vector.shape_cast %100 : vector<1x2x4xf32> to vector<2x4xf32>
    %102 = arith.subf %98, %101 : vector<2x4xf32>
    %103 = arith.index_cast %c2_i32 : i32 to index
    %c0_61 = arith.constant 0 : index
    %c0_62 = arith.constant 0 : index
    %104 = vector.load %arg12[%103, %c0_61, %c0_62] : memref<8x2x4xf32, #tpu.memory_space<vmem>>, vector<1x2x4xf32>
    %105 = vector.shape_cast %104 : vector<1x2x4xf32> to vector<2x4xf32>
    %106 = vector.shape_cast %102 : vector<2x4xf32> to vector<1x2x4xf32>
    tpu.vector_store %arg12[%103, %c0_61, %c0_62], %106 {strides = array<i32>} : memref<8x2x4xf32, #tpu.memory_space<vmem>>, vector<1x2x4xf32>,
    %cst_63 = arith.constant dense<0.000000e+00> : vector<2x32xf32>
    %107 = tpu.matmul %102, %5, %cst_63 {dimension_numbers = #tpu.dot_dimension_numbers<[1], [0], [0], [1], [0, 0, 1, 1], [], []>} : vector<2x4xf32>, vector<4x32xf32>, vector<2x32xf32> -> vector<2x32xf32>
    %108 = arith.mulf %96, %96 : vector<2x32xf32>
    %cst_64 = arith.constant 1.000000e+00 : f32
    %109 = vector.broadcast %cst_64 : f32 to vector<2x32xf32>
    %110 = arith.subf %109, %108 : vector<2x32xf32>
    %cst_65 = arith.constant 1.000000e-01 : f32
    %111 = vector.broadcast %cst_65 : f32 to vector<2x32xf32>
    %112 = arith.mulf %111, %110 : vector<2x32xf32>
    %113 = arith.mulf %112, %107 : vector<2x32xf32>
    %114 = arith.subf %95, %113 : vector<2x32xf32>
    %cst_66 = arith.constant dense<0.000000e+00> : vector<2x8xf32>
    %115 = tpu.matmul %113, %3, %cst_66 {dimension_numbers = #tpu.dot_dimension_numbers<[1], [0], [0], [1], [0, 0, 1, 1], [], []>} : vector<2x32xf32>, vector<32x8xf32>, vector<2x8xf32> -> vector<2x8xf32>
    %116 = arith.mulf %86, %115 : vector<2x8xf32>
    %cst_67 = arith.constant dense<0.000000e+00> : vector<2x4xf32>
    %117 = tpu.matmul %116, %2, %cst_67 {dimension_numbers = #tpu.dot_dimension_numbers<[1], [0], [0], [1], [0, 0, 1, 1], [], []>} : vector<2x8xf32>, vector<8x4xf32>, vector<2x4xf32> -> vector<2x4xf32>
    %cst_68 = arith.constant 5.000000e-02 : f32
    %118 = vector.broadcast %cst_68 : f32 to vector<2x4xf32>
    %119 = arith.mulf %118, %117 : vector<2x4xf32>
    %120 = arith.subf %84, %119 : vector<2x4xf32>
    %c3_i32 = arith.constant 3 : i32
    %121 = math.tanh %114 : vector<2x32xf32>
    %cst_69 = arith.constant dense<0.000000e+00> : vector<2x8xf32>
    %122 = tpu.matmul %121, %0, %cst_69 {dimension_numbers = #tpu.dot_dimension_numbers<[1], [0], [0], [1], [0, 0, 1, 1], [], []>} : vector<2x32xf32>, vector<32x8xf32>, vector<2x8xf32> -> vector<2x8xf32>
    %cst_70 = arith.constant dense<0.000000e+00> : vector<2x8xf32>
    %123 = tpu.matmul %120, %1, %cst_70 {dimension_numbers = #tpu.dot_dimension_numbers<[1], [0], [0], [1], [0, 0, 1, 1], [], []>} : vector<2x4xf32>, vector<4x8xf32>, vector<2x8xf32> -> vector<2x8xf32>
    %124 = arith.mulf %122, %123 : vector<2x8xf32>
    %cst_71 = arith.constant dense<0.000000e+00> : vector<2x32xf32>
    %125 = tpu.matmul %124, %4, %cst_71 {dimension_numbers = #tpu.dot_dimension_numbers<[1], [0], [0], [1], [0, 0, 1, 1], [], []>} : vector<2x8xf32>, vector<8x32xf32>, vector<2x32xf32> -> vector<2x32xf32>
    %cst_72 = arith.constant 0.899999976 : f32
    %126 = vector.broadcast %cst_72 : f32 to vector<2x32xf32>
    %127 = arith.mulf %126, %114 : vector<2x32xf32>
    %cst_73 = arith.constant 1.000000e-01 : f32
    %128 = vector.broadcast %cst_73 : f32 to vector<2x32xf32>
    %129 = arith.mulf %128, %125 : vector<2x32xf32>
    %130 = arith.addf %127, %129 : vector<2x32xf32>
    %131 = arith.addf %130, %9 : vector<2x32xf32>
    %132 = math.tanh %131 : vector<2x32xf32>
    %cst_74 = arith.constant dense<0.000000e+00> : vector<2x4xf32>
    %133 = tpu.matmul %132, %6, %cst_74 {dimension_numbers = #tpu.dot_dimension_numbers<[1], [0], [0], [1], [0, 0, 1, 1], [], []>} : vector<2x32xf32>, vector<32x4xf32>, vector<2x4xf32> -> vector<2x4xf32>
    %134 = arith.addf %133, %10 : vector<2x4xf32>
    %135 = arith.index_cast %c3_i32 : i32 to index
    %c0_75 = arith.constant 0 : index
    %c0_76 = arith.constant 0 : index
    %136 = vector.load %arg0[%135, %c0_75, %c0_76] : memref<8x2x4xf32, #tpu.memory_space<vmem>>, vector<1x2x4xf32>
    %137 = vector.shape_cast %136 : vector<1x2x4xf32> to vector<2x4xf32>
    %138 = arith.subf %134, %137 : vector<2x4xf32>
    %139 = arith.index_cast %c3_i32 : i32 to index
    %c0_77 = arith.constant 0 : index
    %c0_78 = arith.constant 0 : index
    %140 = vector.load %arg12[%139, %c0_77, %c0_78] : memref<8x2x4xf32, #tpu.memory_space<vmem>>, vector<1x2x4xf32>
    %141 = vector.shape_cast %140 : vector<1x2x4xf32> to vector<2x4xf32>
    %142 = vector.shape_cast %138 : vector<2x4xf32> to vector<1x2x4xf32>
    tpu.vector_store %arg12[%139, %c0_77, %c0_78], %142 {strides = array<i32>} : memref<8x2x4xf32, #tpu.memory_space<vmem>>, vector<1x2x4xf32>,
    %cst_79 = arith.constant dense<0.000000e+00> : vector<2x32xf32>
    %143 = tpu.matmul %138, %5, %cst_79 {dimension_numbers = #tpu.dot_dimension_numbers<[1], [0], [0], [1], [0, 0, 1, 1], [], []>} : vector<2x4xf32>, vector<4x32xf32>, vector<2x32xf32> -> vector<2x32xf32>
    %144 = arith.mulf %132, %132 : vector<2x32xf32>
    %cst_80 = arith.constant 1.000000e+00 : f32
    %145 = vector.broadcast %cst_80 : f32 to vector<2x32xf32>
    %146 = arith.subf %145, %144 : vector<2x32xf32>
    %cst_81 = arith.constant 1.000000e-01 : f32
    %147 = vector.broadcast %cst_81 : f32 to vector<2x32xf32>
    %148 = arith.mulf %147, %146 : vector<2x32xf32>
    %149 = arith.mulf %148, %143 : vector<2x32xf32>
    %150 = arith.subf %131, %149 : vector<2x32xf32>
    %cst_82 = arith.constant dense<0.000000e+00> : vector<2x8xf32>
    %151 = tpu.matmul %149, %3, %cst_82 {dimension_numbers = #tpu.dot_dimension_numbers<[1], [0], [0], [1], [0, 0, 1, 1], [], []>} : vector<2x32xf32>, vector<32x8xf32>, vector<2x8xf32> -> vector<2x8xf32>
    %152 = arith.mulf %122, %151 : vector<2x8xf32>
    %cst_83 = arith.constant dense<0.000000e+00> : vector<2x4xf32>
    %153 = tpu.matmul %152, %2, %cst_83 {dimension_numbers = #tpu.dot_dimension_numbers<[1], [0], [0], [1], [0, 0, 1, 1], [], []>} : vector<2x8xf32>, vector<8x4xf32>, vector<2x4xf32> -> vector<2x4xf32>
    %cst_84 = arith.constant 5.000000e-02 : f32
    %154 = vector.broadcast %cst_84 : f32 to vector<2x4xf32>
    %155 = arith.mulf %154, %153 : vector<2x4xf32>
    %156 = arith.subf %120, %155 : vector<2x4xf32>
    %c4_i32 = arith.constant 4 : i32
    %157 = math.tanh %150 : vector<2x32xf32>
    %cst_85 = arith.constant dense<0.000000e+00> : vector<2x8xf32>
    %158 = tpu.matmul %157, %0, %cst_85 {dimension_numbers = #tpu.dot_dimension_numbers<[1], [0], [0], [1], [0, 0, 1, 1], [], []>} : vector<2x32xf32>, vector<32x8xf32>, vector<2x8xf32> -> vector<2x8xf32>
    %cst_86 = arith.constant dense<0.000000e+00> : vector<2x8xf32>
    %159 = tpu.matmul %156, %1, %cst_86 {dimension_numbers = #tpu.dot_dimension_numbers<[1], [0], [0], [1], [0, 0, 1, 1], [], []>} : vector<2x4xf32>, vector<4x8xf32>, vector<2x8xf32> -> vector<2x8xf32>
    %160 = arith.mulf %158, %159 : vector<2x8xf32>
    %cst_87 = arith.constant dense<0.000000e+00> : vector<2x32xf32>
    %161 = tpu.matmul %160, %4, %cst_87 {dimension_numbers = #tpu.dot_dimension_numbers<[1], [0], [0], [1], [0, 0, 1, 1], [], []>} : vector<2x8xf32>, vector<8x32xf32>, vector<2x32xf32> -> vector<2x32xf32>
    %cst_88 = arith.constant 0.899999976 : f32
    %162 = vector.broadcast %cst_88 : f32 to vector<2x32xf32>
    %163 = arith.mulf %162, %150 : vector<2x32xf32>
    %cst_89 = arith.constant 1.000000e-01 : f32
    %164 = vector.broadcast %cst_89 : f32 to vector<2x32xf32>
    %165 = arith.mulf %164, %161 : vector<2x32xf32>
    %166 = arith.addf %163, %165 : vector<2x32xf32>
    %167 = arith.addf %166, %9 : vector<2x32xf32>
    %168 = math.tanh %167 : vector<2x32xf32>
    %cst_90 = arith.constant dense<0.000000e+00> : vector<2x4xf32>
    %169 = tpu.matmul %168, %6, %cst_90 {dimension_numbers = #tpu.dot_dimension_numbers<[1], [0], [0], [1], [0, 0, 1, 1], [], []>} : vector<2x32xf32>, vector<32x4xf32>, vector<2x4xf32> -> vector<2x4xf32>
    %170 = arith.addf %169, %10 : vector<2x4xf32>
    %171 = arith.index_cast %c4_i32 : i32 to index
    %c0_91 = arith.constant 0 : index
    %c0_92 = arith.constant 0 : index
    %172 = vector.load %arg0[%171, %c0_91, %c0_92] : memref<8x2x4xf32, #tpu.memory_space<vmem>>, vector<1x2x4xf32>
    %173 = vector.shape_cast %172 : vector<1x2x4xf32> to vector<2x4xf32>
    %174 = arith.subf %170, %173 : vector<2x4xf32>
    %175 = arith.index_cast %c4_i32 : i32 to index
    %c0_93 = arith.constant 0 : index
    %c0_94 = arith.constant 0 : index
    %176 = vector.load %arg12[%175, %c0_93, %c0_94] : memref<8x2x4xf32, #tpu.memory_space<vmem>>, vector<1x2x4xf32>
    %177 = vector.shape_cast %176 : vector<1x2x4xf32> to vector<2x4xf32>
    %178 = vector.shape_cast %174 : vector<2x4xf32> to vector<1x2x4xf32>
    tpu.vector_store %arg12[%175, %c0_93, %c0_94], %178 {strides = array<i32>} : memref<8x2x4xf32, #tpu.memory_space<vmem>>, vector<1x2x4xf32>,
    %cst_95 = arith.constant dense<0.000000e+00> : vector<2x32xf32>
    %179 = tpu.matmul %174, %5, %cst_95 {dimension_numbers = #tpu.dot_dimension_numbers<[1], [0], [0], [1], [0, 0, 1, 1], [], []>} : vector<2x4xf32>, vector<4x32xf32>, vector<2x32xf32> -> vector<2x32xf32>
    %180 = arith.mulf %168, %168 : vector<2x32xf32>
    %cst_96 = arith.constant 1.000000e+00 : f32
    %181 = vector.broadcast %cst_96 : f32 to vector<2x32xf32>
    %182 = arith.subf %181, %180 : vector<2x32xf32>
    %cst_97 = arith.constant 1.000000e-01 : f32
    %183 = vector.broadcast %cst_97 : f32 to vector<2x32xf32>
    %184 = arith.mulf %183, %182 : vector<2x32xf32>
    %185 = arith.mulf %184, %179 : vector<2x32xf32>
    %186 = arith.subf %167, %185 : vector<2x32xf32>
    %cst_98 = arith.constant dense<0.000000e+00> : vector<2x8xf32>
    %187 = tpu.matmul %185, %3, %cst_98 {dimension_numbers = #tpu.dot_dimension_numbers<[1], [0], [0], [1], [0, 0, 1, 1], [], []>} : vector<2x32xf32>, vector<32x8xf32>, vector<2x8xf32> -> vector<2x8xf32>
    %188 = arith.mulf %158, %187 : vector<2x8xf32>
    %cst_99 = arith.constant dense<0.000000e+00> : vector<2x4xf32>
    %189 = tpu.matmul %188, %2, %cst_99 {dimension_numbers = #tpu.dot_dimension_numbers<[1], [0], [0], [1], [0, 0, 1, 1], [], []>} : vector<2x8xf32>, vector<8x4xf32>, vector<2x4xf32> -> vector<2x4xf32>
    %cst_100 = arith.constant 5.000000e-02 : f32
    %190 = vector.broadcast %cst_100 : f32 to vector<2x4xf32>
    %191 = arith.mulf %190, %189 : vector<2x4xf32>
    %192 = arith.subf %156, %191 : vector<2x4xf32>
    %c5_i32 = arith.constant 5 : i32
    %193 = math.tanh %186 : vector<2x32xf32>
    %cst_101 = arith.constant dense<0.000000e+00> : vector<2x8xf32>
    %194 = tpu.matmul %193, %0, %cst_101 {dimension_numbers = #tpu.dot_dimension_numbers<[1], [0], [0], [1], [0, 0, 1, 1], [], []>} : vector<2x32xf32>, vector<32x8xf32>, vector<2x8xf32> -> vector<2x8xf32>
    %cst_102 = arith.constant dense<0.000000e+00> : vector<2x8xf32>
    %195 = tpu.matmul %192, %1, %cst_102 {dimension_numbers = #tpu.dot_dimension_numbers<[1], [0], [0], [1], [0, 0, 1, 1], [], []>} : vector<2x4xf32>, vector<4x8xf32>, vector<2x8xf32> -> vector<2x8xf32>
    %196 = arith.mulf %194, %195 : vector<2x8xf32>
    %cst_103 = arith.constant dense<0.000000e+00> : vector<2x32xf32>
    %197 = tpu.matmul %196, %4, %cst_103 {dimension_numbers = #tpu.dot_dimension_numbers<[1], [0], [0], [1], [0, 0, 1, 1], [], []>} : vector<2x8xf32>, vector<8x32xf32>, vector<2x32xf32> -> vector<2x32xf32>
    %cst_104 = arith.constant 0.899999976 : f32
    %198 = vector.broadcast %cst_104 : f32 to vector<2x32xf32>
    %199 = arith.mulf %198, %186 : vector<2x32xf32>
    %cst_105 = arith.constant 1.000000e-01 : f32
    %200 = vector.broadcast %cst_105 : f32 to vector<2x32xf32>
    %201 = arith.mulf %200, %197 : vector<2x32xf32>
    %202 = arith.addf %199, %201 : vector<2x32xf32>
    %203 = arith.addf %202, %9 : vector<2x32xf32>
    %204 = math.tanh %203 : vector<2x32xf32>
    %cst_106 = arith.constant dense<0.000000e+00> : vector<2x4xf32>
    %205 = tpu.matmul %204, %6, %cst_106 {dimension_numbers = #tpu.dot_dimension_numbers<[1], [0], [0], [1], [0, 0, 1, 1], [], []>} : vector<2x32xf32>, vector<32x4xf32>, vector<2x4xf32> -> vector<2x4xf32>
    %206 = arith.addf %205, %10 : vector<2x4xf32>
    %207 = arith.index_cast %c5_i32 : i32 to index
    %c0_107 = arith.constant 0 : index
    %c0_108 = arith.constant 0 : index
    %208 = vector.load %arg0[%207, %c0_107, %c0_108] : memref<8x2x4xf32, #tpu.memory_space<vmem>>, vector<1x2x4xf32>
    %209 = vector.shape_cast %208 : vector<1x2x4xf32> to vector<2x4xf32>
    %210 = arith.subf %206, %209 : vector<2x4xf32>
    %211 = arith.index_cast %c5_i32 : i32 to index
    %c0_109 = arith.constant 0 : index
    %c0_110 = arith.constant 0 : index
    %212 = vector.load %arg12[%211, %c0_109, %c0_110] : memref<8x2x4xf32, #tpu.memory_space<vmem>>, vector<1x2x4xf32>
    %213 = vector.shape_cast %212 : vector<1x2x4xf32> to vector<2x4xf32>
    %214 = vector.shape_cast %210 : vector<2x4xf32> to vector<1x2x4xf32>
    tpu.vector_store %arg12[%211, %c0_109, %c0_110], %214 {strides = array<i32>} : memref<8x2x4xf32, #tpu.memory_space<vmem>>, vector<1x2x4xf32>,
    %cst_111 = arith.constant dense<0.000000e+00> : vector<2x32xf32>
    %215 = tpu.matmul %210, %5, %cst_111 {dimension_numbers = #tpu.dot_dimension_numbers<[1], [0], [0], [1], [0, 0, 1, 1], [], []>} : vector<2x4xf32>, vector<4x32xf32>, vector<2x32xf32> -> vector<2x32xf32>
    %216 = arith.mulf %204, %204 : vector<2x32xf32>
    %cst_112 = arith.constant 1.000000e+00 : f32
    %217 = vector.broadcast %cst_112 : f32 to vector<2x32xf32>
    %218 = arith.subf %217, %216 : vector<2x32xf32>
    %cst_113 = arith.constant 1.000000e-01 : f32
    %219 = vector.broadcast %cst_113 : f32 to vector<2x32xf32>
    %220 = arith.mulf %219, %218 : vector<2x32xf32>
    %221 = arith.mulf %220, %215 : vector<2x32xf32>
    %222 = arith.subf %203, %221 : vector<2x32xf32>
    %cst_114 = arith.constant dense<0.000000e+00> : vector<2x8xf32>
    %223 = tpu.matmul %221, %3, %cst_114 {dimension_numbers = #tpu.dot_dimension_numbers<[1], [0], [0], [1], [0, 0, 1, 1], [], []>} : vector<2x32xf32>, vector<32x8xf32>, vector<2x8xf32> -> vector<2x8xf32>
    %224 = arith.mulf %194, %223 : vector<2x8xf32>
    %cst_115 = arith.constant dense<0.000000e+00> : vector<2x4xf32>
    %225 = tpu.matmul %224, %2, %cst_115 {dimension_numbers = #tpu.dot_dimension_numbers<[1], [0], [0], [1], [0, 0, 1, 1], [], []>} : vector<2x8xf32>, vector<8x4xf32>, vector<2x4xf32> -> vector<2x4xf32>
    %cst_116 = arith.constant 5.000000e-02 : f32
    %226 = vector.broadcast %cst_116 : f32 to vector<2x4xf32>
    %227 = arith.mulf %226, %225 : vector<2x4xf32>
    %228 = arith.subf %192, %227 : vector<2x4xf32>
    %c6_i32 = arith.constant 6 : i32
    %229 = math.tanh %222 : vector<2x32xf32>
    %cst_117 = arith.constant dense<0.000000e+00> : vector<2x8xf32>
    %230 = tpu.matmul %229, %0, %cst_117 {dimension_numbers = #tpu.dot_dimension_numbers<[1], [0], [0], [1], [0, 0, 1, 1], [], []>} : vector<2x32xf32>, vector<32x8xf32>, vector<2x8xf32> -> vector<2x8xf32>
    %cst_118 = arith.constant dense<0.000000e+00> : vector<2x8xf32>
    %231 = tpu.matmul %228, %1, %cst_118 {dimension_numbers = #tpu.dot_dimension_numbers<[1], [0], [0], [1], [0, 0, 1, 1], [], []>} : vector<2x4xf32>, vector<4x8xf32>, vector<2x8xf32> -> vector<2x8xf32>
    %232 = arith.mulf %230, %231 : vector<2x8xf32>
    %cst_119 = arith.constant dense<0.000000e+00> : vector<2x32xf32>
    %233 = tpu.matmul %232, %4, %cst_119 {dimension_numbers = #tpu.dot_dimension_numbers<[1], [0], [0], [1], [0, 0, 1, 1], [], []>} : vector<2x8xf32>, vector<8x32xf32>, vector<2x32xf32> -> vector<2x32xf32>
    %cst_120 = arith.constant 0.899999976 : f32
    %234 = vector.broadcast %cst_120 : f32 to vector<2x32xf32>
    %235 = arith.mulf %234, %222 : vector<2x32xf32>
    %cst_121 = arith.constant 1.000000e-01 : f32
    %236 = vector.broadcast %cst_121 : f32 to vector<2x32xf32>
    %237 = arith.mulf %236, %233 : vector<2x32xf32>
    %238 = arith.addf %235, %237 : vector<2x32xf32>
    %239 = arith.addf %238, %9 : vector<2x32xf32>
    %240 = math.tanh %239 : vector<2x32xf32>
    %cst_122 = arith.constant dense<0.000000e+00> : vector<2x4xf32>
    %241 = tpu.matmul %240, %6, %cst_122 {dimension_numbers = #tpu.dot_dimension_numbers<[1], [0], [0], [1], [0, 0, 1, 1], [], []>} : vector<2x32xf32>, vector<32x4xf32>, vector<2x4xf32> -> vector<2x4xf32>
    %242 = arith.addf %241, %10 : vector<2x4xf32>
    %243 = arith.index_cast %c6_i32 : i32 to index
    %c0_123 = arith.constant 0 : index
    %c0_124 = arith.constant 0 : index
    %244 = vector.load %arg0[%243, %c0_123, %c0_124] : memref<8x2x4xf32, #tpu.memory_space<vmem>>, vector<1x2x4xf32>
    %245 = vector.shape_cast %244 : vector<1x2x4xf32> to vector<2x4xf32>
    %246 = arith.subf %242, %245 : vector<2x4xf32>
    %247 = arith.index_cast %c6_i32 : i32 to index
    %c0_125 = arith.constant 0 : index
    %c0_126 = arith.constant 0 : index
    %248 = vector.load %arg12[%247, %c0_125, %c0_126] : memref<8x2x4xf32, #tpu.memory_space<vmem>>, vector<1x2x4xf32>
    %249 = vector.shape_cast %248 : vector<1x2x4xf32> to vector<2x4xf32>
    %250 = vector.shape_cast %246 : vector<2x4xf32> to vector<1x2x4xf32>
    tpu.vector_store %arg12[%247, %c0_125, %c0_126], %250 {strides = array<i32>} : memref<8x2x4xf32, #tpu.memory_space<vmem>>, vector<1x2x4xf32>,
    %cst_127 = arith.constant dense<0.000000e+00> : vector<2x32xf32>
    %251 = tpu.matmul %246, %5, %cst_127 {dimension_numbers = #tpu.dot_dimension_numbers<[1], [0], [0], [1], [0, 0, 1, 1], [], []>} : vector<2x4xf32>, vector<4x32xf32>, vector<2x32xf32> -> vector<2x32xf32>
    %252 = arith.mulf %240, %240 : vector<2x32xf32>
    %cst_128 = arith.constant 1.000000e+00 : f32
    %253 = vector.broadcast %cst_128 : f32 to vector<2x32xf32>
    %254 = arith.subf %253, %252 : vector<2x32xf32>
    %cst_129 = arith.constant 1.000000e-01 : f32
    %255 = vector.broadcast %cst_129 : f32 to vector<2x32xf32>
    %256 = arith.mulf %255, %254 : vector<2x32xf32>
    %257 = arith.mulf %256, %251 : vector<2x32xf32>
    %258 = arith.subf %239, %257 : vector<2x32xf32>
    %cst_130 = arith.constant dense<0.000000e+00> : vector<2x8xf32>
    %259 = tpu.matmul %257, %3, %cst_130 {dimension_numbers = #tpu.dot_dimension_numbers<[1], [0], [0], [1], [0, 0, 1, 1], [], []>} : vector<2x32xf32>, vector<32x8xf32>, vector<2x8xf32> -> vector<2x8xf32>
    %260 = arith.mulf %230, %259 : vector<2x8xf32>
    %cst_131 = arith.constant dense<0.000000e+00> : vector<2x4xf32>
    %261 = tpu.matmul %260, %2, %cst_131 {dimension_numbers = #tpu.dot_dimension_numbers<[1], [0], [0], [1], [0, 0, 1, 1], [], []>} : vector<2x8xf32>, vector<8x4xf32>, vector<2x4xf32> -> vector<2x4xf32>
    %cst_132 = arith.constant 5.000000e-02 : f32
    %262 = vector.broadcast %cst_132 : f32 to vector<2x4xf32>
    %263 = arith.mulf %262, %261 : vector<2x4xf32>
    %264 = arith.subf %228, %263 : vector<2x4xf32>
    %c7_i32 = arith.constant 7 : i32
    %265 = math.tanh %258 : vector<2x32xf32>
    %cst_133 = arith.constant dense<0.000000e+00> : vector<2x8xf32>
    %266 = tpu.matmul %265, %0, %cst_133 {dimension_numbers = #tpu.dot_dimension_numbers<[1], [0], [0], [1], [0, 0, 1, 1], [], []>} : vector<2x32xf32>, vector<32x8xf32>, vector<2x8xf32> -> vector<2x8xf32>
    %cst_134 = arith.constant dense<0.000000e+00> : vector<2x8xf32>
    %267 = tpu.matmul %264, %1, %cst_134 {dimension_numbers = #tpu.dot_dimension_numbers<[1], [0], [0], [1], [0, 0, 1, 1], [], []>} : vector<2x4xf32>, vector<4x8xf32>, vector<2x8xf32> -> vector<2x8xf32>
    %268 = arith.mulf %266, %267 : vector<2x8xf32>
    %cst_135 = arith.constant dense<0.000000e+00> : vector<2x32xf32>
    %269 = tpu.matmul %268, %4, %cst_135 {dimension_numbers = #tpu.dot_dimension_numbers<[1], [0], [0], [1], [0, 0, 1, 1], [], []>} : vector<2x8xf32>, vector<8x32xf32>, vector<2x32xf32> -> vector<2x32xf32>
    %cst_136 = arith.constant 0.899999976 : f32
    %270 = vector.broadcast %cst_136 : f32 to vector<2x32xf32>
    %271 = arith.mulf %270, %258 : vector<2x32xf32>
    %cst_137 = arith.constant 1.000000e-01 : f32
    %272 = vector.broadcast %cst_137 : f32 to vector<2x32xf32>
    %273 = arith.mulf %272, %269 : vector<2x32xf32>
    %274 = arith.addf %271, %273 : vector<2x32xf32>
    %275 = arith.addf %274, %9 : vector<2x32xf32>
    %276 = math.tanh %275 : vector<2x32xf32>
    %cst_138 = arith.constant dense<0.000000e+00> : vector<2x4xf32>
    %277 = tpu.matmul %276, %6, %cst_138 {dimension_numbers = #tpu.dot_dimension_numbers<[1], [0], [0], [1], [0, 0, 1, 1], [], []>} : vector<2x32xf32>, vector<32x4xf32>, vector<2x4xf32> -> vector<2x4xf32>
    %278 = arith.addf %277, %10 : vector<2x4xf32>
    %279 = arith.index_cast %c7_i32 : i32 to index
    %c0_139 = arith.constant 0 : index
    %c0_140 = arith.constant 0 : index
    %280 = vector.load %arg0[%279, %c0_139, %c0_140] : memref<8x2x4xf32, #tpu.memory_space<vmem>>, vector<1x2x4xf32>
    %281 = vector.shape_cast %280 : vector<1x2x4xf32> to vector<2x4xf32>
    %282 = arith.subf %278, %281 : vector<2x4xf32>
    %283 = arith.index_cast %c7_i32 : i32 to index
    %c0_141 = arith.constant 0 : index
    %c0_142 = arith.constant 0 : index
    %284 = vector.load %arg12[%283, %c0_141, %c0_142] : memref<8x2x4xf32, #tpu.memory_space<vmem>>, vector<1x2x4xf32>
    %285 = vector.shape_cast %284 : vector<1x2x4xf32> to vector<2x4xf32>
    %286 = vector.shape_cast %282 : vector<2x4xf32> to vector<1x2x4xf32>
    tpu.vector_store %arg12[%283, %c0_141, %c0_142], %286 {strides = array<i32>} : memref<8x2x4xf32, #tpu.memory_space<vmem>>, vector<1x2x4xf32>,
    %cst_143 = arith.constant dense<0.000000e+00> : vector<2x32xf32>
    %287 = tpu.matmul %282, %5, %cst_143 {dimension_numbers = #tpu.dot_dimension_numbers<[1], [0], [0], [1], [0, 0, 1, 1], [], []>} : vector<2x4xf32>, vector<4x32xf32>, vector<2x32xf32> -> vector<2x32xf32>
    %288 = arith.mulf %276, %276 : vector<2x32xf32>
    %cst_144 = arith.constant 1.000000e+00 : f32
    %289 = vector.broadcast %cst_144 : f32 to vector<2x32xf32>
    %290 = arith.subf %289, %288 : vector<2x32xf32>
    %cst_145 = arith.constant 1.000000e-01 : f32
    %291 = vector.broadcast %cst_145 : f32 to vector<2x32xf32>
    %292 = arith.mulf %291, %290 : vector<2x32xf32>
    %293 = arith.mulf %292, %287 : vector<2x32xf32>
    %294 = arith.subf %275, %293 : vector<2x32xf32>
    %cst_146 = arith.constant dense<0.000000e+00> : vector<2x8xf32>
    %295 = tpu.matmul %293, %3, %cst_146 {dimension_numbers = #tpu.dot_dimension_numbers<[1], [0], [0], [1], [0, 0, 1, 1], [], []>} : vector<2x32xf32>, vector<32x8xf32>, vector<2x8xf32> -> vector<2x8xf32>
    %296 = arith.mulf %266, %295 : vector<2x8xf32>
    %cst_147 = arith.constant dense<0.000000e+00> : vector<2x4xf32>
    %297 = tpu.matmul %296, %2, %cst_147 {dimension_numbers = #tpu.dot_dimension_numbers<[1], [0], [0], [1], [0, 0, 1, 1], [], []>} : vector<2x8xf32>, vector<8x4xf32>, vector<2x4xf32> -> vector<2x4xf32>
    %cst_148 = arith.constant 5.000000e-02 : f32
    %298 = vector.broadcast %cst_148 : f32 to vector<2x4xf32>
    %299 = arith.mulf %298, %297 : vector<2x4xf32>
    %300 = arith.subf %264, %299 : vector<2x4xf32>
    %c8_i32 = arith.constant 8 : i32
    return
  }
}

</mosaic_0001>

<bundles_post_ra>
// kernel: tpu_custom_call.1
= control target key start
LH: loop header
LB: loop body
LE: loop exit
PB: predicated region body
PF: predicated region fallthrough
CT: control target
= control target key end

     0   :  { %v4930_v0 = vmov 0.0|0.0   ;;  %vm4931_vm0 = vmmov 0   ;;  %v4932_v4 = vmov 0.0   ;;  %vm63_vm1 = vcmask 261120   ;;  %s5514_s3 = inlined_call_operand.vmem [shape: f32[32,8], index: 3, kind: input, shape index: {}]   ;;  %s5515_s2 = inlined_call_operand.vmem [shape: f32[2,32], index: 2, kind: input, shape index: {}]   ;;  %s5516_s4 = inlined_call_operand.vmem [shape: f32[4,8], index: 4, kind: input, shape index: {}]   ;;  %s5517_s1 = inlined_call_operand.vmem [shape: f32[2,4], index: 1, kind: input, shape index: {}]   ;;  %s5518_s7 = inlined_call_operand.vmem [shape: f32[8,32], index: 7, kind: input, shape index: {}]   ;;  %s5519_s9 = inlined_call_operand.vmem [shape: f32[32,4], index: 9, kind: input, shape index: {}]   ;;  %s5520_s10 = inlined_call_operand.vmem [shape: f32[2,32], index: 10, kind: input, shape index: {}]   ;;  %s5521_s8 = inlined_call_operand.vmem [shape: f32[4,32], index: 8, kind: input, shape index: {}]   ;;  %s5522_s11 = inlined_call_operand.vmem [shape: f32[2,4], index: 11, kind: input, shape index: {}]   ;;  %s5523_s6 = inlined_call_operand.vmem [shape: f32[32,8], index: 6, kind: input, shape index: {}]   ;;  %s5524_s0 = inlined_call_operand.vmem [shape: f32[8,2,4], index: 0, kind: input, shape index: {}]   ;;  %s5525_s12 = inlined_call_operand.vmem [shape: f32[8,2,4], index: 12, kind: output, shape index: {}]   ;;  %s5526_s5 = inlined_call_operand.vmem [shape: f32[8,4], index: 5, kind: input, shape index: {}]  }
   0x1   :  { %4756 = vmatprep.subr.bf16.mxu0 %v4930_v0  ;;  %v41_v1 = vld [vmem:[%s5514_s3] sm:$0xff]  ;;  %v42_v2 = vld [vmem:[%s5514_s3 + $0x8] sm:$0xff]  ;;  %v43_v3 = vld [vmem:[%s5514_s3 + $0x10] sm:$0xff]  ;;  %4361 = vmatprep.mubr.msk.f32.mxu0 %vm4931_vm0, %v4932_v4  ;;  %vm141_vm2 = vcmask 1043456   ;;  %vm137_vm3 = vcmask 31744   ;;  %vm216_vm4 = vcmask 64512  }
   0x2   :  { %v5010_v5 = vpack.c.bf16 %v42_v2, %v41_v1  ;;  %v44_v6 = vld [vmem:[%s5514_s3 + $0x18] sm:$0xff]  ;;  %v60_v7 = vld [vmem:[%s5515_s2] sm:$0x3]  ;;  %4369 = vmatprep.subr.mxu1 %v4932_v4  ;;  %4371 = vmatprep.mubr.msk.f32.mxu1 %vm4931_vm0, %v4932_v4  ;;  %v54_v19 = vld [vmem:[%s5519_s9 + $0x8] sm:$0xff]  ;;  %vm370_vm5 = vcmask 25600  }
   0x3   :  { %4897 = vtanh.f32 %v60_v7  ;;  %v5022_v8 = vpack.c.bf16 %v44_v6, %v43_v3  ;;  %v5030_v9 = vld [vmem:[%s5516_s4] sm:$0xf]  ;;  %v55_v20 = vld [vmem:[%s5519_s9 + $0x10] sm:$0xff]  ;;  %v56_v22 = vld [vmem:[%s5519_s9 + $0x18] sm:$0xff]  ;;  %v290_v25 = vmul.f32 0.9, %v60_v7 }
   0x4   :  { %4758 = vmatpush3.bf16.msra.mxu0 %v5010_v5  ;;  %v5040_v11 = vld [vmem:[%s5517_s1] sm:$0x3]  ;;  %v5075_v23 = vpack.c.bf16 %v56_v22, %v55_v20  ;;  %v48_v36 = vld [vmem:[%s5523_s6 + $0x8] sm:$0xff]  ;;  %v49_v43 = vld [vmem:[%s5523_s6 + $0x10] sm:$0xff] }
   0x5   :  { %4759 = vmatprep.subr.bf16.mxu0 %v4930_v0  ;;  %v5050_v12 = vld [vmem:[%s5518_s7] sm:$0xff]  ;;  %v50_v44 = vld [vmem:[%s5523_s6 + $0x18] sm:$0xff] }
   0x6   :  { %4370 = vmatpush3.msra.mxu1 %v5050_v12  ;;  %v53_v18 = vld [vmem:[%s5519_s9] sm:$0xff]  ;;  %v5129_v45 = vpack.c.bf16 %v50_v44, %v49_v43 }
   0x7   :  { %4762 = vmatprep.subr.bf16.mxu1 %v4930_v0  ;;  %v5069_v21 = vpack.c.bf16 %v54_v19, %v53_v18  ;;  %v57_v24 = vld [vmem:[%s5520_s10] sm:$0x3] }
   0x8   :  { %4761 = vmatpush3.bf16.msra.mxu0 %v5022_v8  ;;  %v5083_v27 = vmul.f32 0.1, %v57_v24  ;;  %v5092_v33 = vld [vmem:[%s5521_s8] sm:$0xf] }
   0x9   :  { %4364 = vmatprep.subr.mxu0 %v4932_v4  ;;  %v5100_v34 = vld [vmem:[%s5522_s11] sm:$0x3] }
   0xa   :  { %v47_v35 = vld [vmem:[%s5523_s6] sm:$0xff] }
   0xb   :  { %v368_v38 = vld [vmem:[%s5524_s0] sm:$0x3]  ;;  %v5112_v41 = vpack.c.bf16 %v48_v36, %v47_v35 }
   0xc   :  { %v5136_v46 = vld [vmem:[%s5526_s5] sm:$0xff] }
   0xd   :  { %v4898_v10 = vpop.eup %4897 }
   0xe   :  { %4362 = vmatmul.mubr.msk.f32.vlgmr.msra.gmra.mrb[0].mxu0 %vm63_vm1, %v4898_v10 }
   0xf   :  { %4365 = vmatpush3.msk.msra.mxu0 %vm141_vm2, %v5030_v9  ;;  %4366 = vmatprep.mubr.msk.f32.mxu0 %vm4931_vm0, %v4932_v4 }
  0x10   :  { %4385 = vmatprep.subr.mxu0 %v4932_v4 }
  0x12   :  { %4367 = vmatmul.mubr.msk.f32.vlgmr.msra.gmra.mrb[2].mxu0 %vm137_vm3, %v5040_v11 }
  0x13   :  { %4387 = vmatprep.mubr.msk.f32.mxu0 %vm4931_vm0, %v4932_v4  ;;  %4386 = vmatpush3.msk.msra.mxu0 %vm141_vm2, %v5092_v33 }
  0x14   :  { %4768 = vmatprep.subr.bf16.mxu0 %v4930_v0 }
  0xe1   :  { %v5054_v13 = vpop.f32.mrb[0].mxu0 }
  0xe2   :  { %v4363_v14 = vpop.f32.mrb[1].mxu0 }
  0xe5   :  { %v211_v15 = vpop.f32.mrb[2].mxu0 }
  0xe6   :  { %v215_v16 = vmul.f32 %v211_v15, %v5054_v13  ;;  %v4368_v17 = vpop.f32.mrb[3].mxu0 }
  0xe7   :  { %v4110_v17 = vld [vmem:[%s5524_s0 + $0x2] sm:$0x3] }
  0xe8   :  { %4372 = vmatmul.mubr.msk.f32.vlgmr.msra.gmra.mrb[0].mxu1 %vm216_vm4, %v215_v16 }
  0xe9   :  { %4382 = vmatprep.mubr.msk.f32.mxu1 %vm4931_vm0, %v4932_v4  ;;  %4764 = vmatpush3.bf16.msra.mxu1 %v5069_v21 }
  0xea   :  { %4765 = vmatprep.subr.bf16.mxu1 %v4930_v0 }
  0xed   :  { %4767 = vmatpush3.bf16.msra.mxu1 %v5075_v23 }
  0xee   :  { %4401 = vmatprep.subr.mxu1 %v4932_v4 }
 0x1bb   :  { %v286_v26 = vpop.f32.mrb[0].mxu1 }
 0x1bc   :  { %v291_v28 = vmul.f32 0.1, %v286_v26  ;;  %v4373_v29 = vpop.f32.mrb[1].mxu1 }
 0x1be   :  { %v292_v30 = vadd.f32 %v291_v28, %v290_v25 }
 0x1c0   :  { %v293_v31 = vadd.f32 %v292_v30, %v5083_v27 }
 0x1c2   :  { %4899 = vtanh.f32 %v293_v31 }
 0x1cc   :  { %v4900_v32 = vpop.eup %4899 }
 0x1cd   :  { %4383 = vmatmul.mubr.msk.f32.vlgmr.msra.gmra.mrb[2].mxu1 %vm63_vm1, %v4900_v32  ;;  %v448_v47 = vmul.f32 %v4900_v32, %v4900_v32 }
 0x1ce   :  { %4403 = vmatprep.mubr.msk.f32.mxu1 %vm4931_vm0, %v4932_v4  ;;  %4402 = vmatpush3.msra.mxu1 %v5136_v46 }
 0x1cf   :  { %4774 = vmatprep.subr.bf16.mxu1 %v4930_v0  ;;  %v449_v48 = vsub.f32 1.0, %v448_v47 }
 0x1d1   :  { %v450_v49 = vmul.f32 0.1, %v449_v48 }
 0x2a0   :  { %v364_v37 = vpop.f32.mrb[2].mxu1 }
 0x2a1   :  { %v365_v39 = vadd.f32 %v364_v37, %v5100_v34  ;;  %v4384_v40 = vpop.f32.mrb[3].mxu1 }
 0x2a3   :  { %v369_v42 = vsub.f32 %v365_v39, %v368_v38 }
 0x2a5   :  { %371 = vst.msk [vmem:[%s5525_s12] sm:$0x3] %vm370_vm5, %v369_v42  ;;  %4388 = vmatmul.mubr.msk.f32.vlgmr.msra.gmra.mrb[4].mxu0 %vm137_vm3, %v369_v42 }
 0x2a6   :  { %4770 = vmatpush3.bf16.msra.mxu0 %v5112_v41  ;;  %4398 = vmatprep.mubr.msk.f32.mxu0 %vm4931_vm0, %v4932_v4 }
 0x2a7   :  { %4771 = vmatprep.subr.bf16.mxu0 %v4930_v0 }
 0x2aa   :  { %4773 = vmatpush3.bf16.msra.mxu0 %v5129_v45 }
 0x2ab   :  { %4417 = vmatprep.subr.mxu0 %v4932_v4 }
 0x378   :  { %v444_v50 = vpop.f32.mrb[4].mxu0 }
 0x379   :  { %v451_v51 = vmul.f32 %v450_v49, %v444_v50  ;;  %v4389_v52 = vpop.f32.mrb[5].mxu0 }
 0x37b   :  { %4399 = vmatmul.mubr.msk.f32.vlgmr.msra.gmra.mrb[6].mxu0 %vm63_vm1, %v451_v51  ;;  %v452_v53 = vsub.f32 %v293_v31, %v451_v51 }
 0x37c   :  { %4418 = vmatpush3.msk.msra.mxu0 %vm141_vm2, %v5030_v9  ;;  %4419 = vmatprep.mubr.msk.f32.mxu0 %vm4931_vm0, %v4932_v4 }
 0x37d   :  { %4422 = vmatprep.subr.mxu0 %v4932_v4  ;;  %4901 = vtanh.f32 %v452_v53  ;;  %v823_v7 = vmul.f32 0.9, %v452_v53 }
 0x387   :  { %v4902_v57 = vpop.eup %4901 }
 0x44e   :  { %v522_v54 = vpop.f32.mrb[6].mxu0 }
 0x44f   :  { %v526_v55 = vmul.f32 %v522_v54, %v5054_v13  ;;  %v4400_v56 = vpop.f32.mrb[7].mxu0 }
 0x451   :  { %4404 = vmatmul.mubr.msk.f32.vlgmr.msra.gmra.mrb[4].mxu1 %vm216_vm4, %v526_v55 }
 0x452   :  { %4776 = vmatpush3.bf16.msra.mxu1 %v5010_v5  ;;  %4414 = vmatprep.mubr.msk.f32.mxu1 %vm4931_vm0, %v4932_v4 }
 0x453   :  { %4777 = vmatprep.subr.bf16.mxu1 %v4930_v0 }
 0x456   :  { %4779 = vmatpush3.bf16.msra.mxu1 %v5022_v8 }
 0x457   :  { %4780 = vmatprep.subr.bf16.mxu1 %v4930_v0 }
 0x459   :  { %4415 = vmatmul.mubr.msk.f32.vlgmr.msra.gmra.mrb[6].mxu1 %vm63_vm1, %v4902_v57  ;;  %v4121_v57 = vld [vmem:[%s5524_s0 + $0x4] sm:$0x3] }
 0x45a   :  { %4782 = vmatpush3.bf16.msra.mxu1 %v5069_v21  ;;  %4435 = vmatprep.mubr.msk.f32.mxu1 %vm4931_vm0, %v4932_v4 }
 0x45b   :  { %4783 = vmatprep.subr.bf16.mxu1 %v4930_v0 }
 0x45e   :  { %4785 = vmatpush3.bf16.msra.mxu1 %v5075_v23 }
 0x45f   :  { %4454 = vmatprep.subr.mxu1 %v4932_v4 }
 0x524   :  { %v596_v58 = vpop.f32.mrb[4].mxu1 }
 0x525   :  { %v600_v59 = vmul.f32 0.05, %v596_v58  ;;  %v4405_v60 = vpop.f32.mrb[5].mxu1 }
 0x527   :  { %v5162_v61 = vsub.f32 %v5040_v11, %v600_v59 }
 0x529   :  { %4420 = vmatmul.mubr.msk.f32.vlgmr.msra.gmra.mrb[8].mxu0 %vm137_vm3, %v5162_v61 }
 0x52a   :  { %4423 = vmatpush3.msra.mxu0 %v5050_v12  ;;  %4424 = vmatprep.mubr.msk.f32.mxu0 %vm4931_vm0, %v4932_v4 }
 0x52b   :  { %4438 = vmatprep.subr.mxu0 %v4932_v4 }
 0x52c   :  { %v672_v62 = vpop.f32.mrb[6].mxu1 }
 0x52d   :  { %v4416_v63 = vpop.f32.mrb[7].mxu1 }
 0x5fc   :  { %v745_v1 = vpop.f32.mrb[8].mxu0 }
 0x5fd   :  { %v749_v2 = vmul.f32 %v745_v1, %v672_v62  ;;  %v4421_v3 = vpop.f32.mrb[9].mxu0 }
 0x5ff   :  { %4425 = vmatmul.mubr.msk.f32.vlgmr.msra.gmra.mrb[10].mxu0 %vm216_vm4, %v749_v2 }
 0x600   :  { %4439 = vmatpush3.msk.msra.mxu0 %vm141_vm2, %v5092_v33  ;;  %4440 = vmatprep.mubr.msk.f32.mxu0 %vm4931_vm0, %v4932_v4 }
 0x601   :  { %4786 = vmatprep.subr.bf16.mxu0 %v4930_v0 }
 0x6d2   :  { %v819_v6 = vpop.f32.mrb[10].mxu0 }
 0x6d3   :  { %v824_v10 = vmul.f32 0.1, %v819_v6  ;;  %v4426_v11 = vpop.f32.mrb[11].mxu0 }
 0x6d5   :  { %v825_v13 = vadd.f32 %v824_v10, %v823_v7 }
 0x6d7   :  { %v826_v14 = vadd.f32 %v825_v13, %v5083_v27 }
 0x6d9   :  { %4903 = vtanh.f32 %v826_v14 }
 0x6e3   :  { %v4904_v15 = vpop.eup %4903 }
 0x6e4   :  { %4436 = vmatmul.mubr.msk.f32.vlgmr.msra.gmra.mrb[8].mxu1 %vm63_vm1, %v4904_v15  ;;  %v979_v22 = vmul.f32 %v4904_v15, %v4904_v15 }
 0x6e5   :  { %4455 = vmatpush3.msra.mxu1 %v5136_v46  ;;  %4456 = vmatprep.mubr.msk.f32.mxu1 %vm4931_vm0, %v4932_v4 }
 0x6e6   :  { %4792 = vmatprep.subr.bf16.mxu1 %v4930_v0  ;;  %v980_v24 = vsub.f32 1.0, %v979_v22 }
 0x6e8   :  { %v981_v25 = vmul.f32 0.1, %v980_v24 }
 0x7b7   :  { %v897_v16 = vpop.f32.mrb[8].mxu1 }
 0x7b8   :  { %v898_v18 = vadd.f32 %v897_v16, %v5100_v34  ;;  %v4437_v19 = vpop.f32.mrb[9].mxu1 }
 0x7ba   :  { %v903_v20 = vsub.f32 %v898_v18, %v4110_v17 }
 0x7bc   :  { %4111 = vst.msk [vmem:[%s5525_s12 + $0x2] sm:$0x3] %vm370_vm5, %v903_v20  ;;  %4441 = vmatmul.mubr.msk.f32.vlgmr.msra.gmra.mrb[12].mxu0 %vm137_vm3, %v903_v20 }
 0x7bd   :  { %4788 = vmatpush3.bf16.msra.mxu0 %v5112_v41  ;;  %4451 = vmatprep.mubr.msk.f32.mxu0 %vm4931_vm0, %v4932_v4 }
 0x7be   :  { %4789 = vmatprep.subr.bf16.mxu0 %v4930_v0 }
 0x7c1   :  { %4791 = vmatpush3.bf16.msra.mxu0 %v5129_v45 }
 0x7c2   :  { %4470 = vmatprep.subr.mxu0 %v4932_v4 }
 0x88f   :  { %v975_v26 = vpop.f32.mrb[12].mxu0 }
 0x890   :  { %v982_v28 = vmul.f32 %v981_v25, %v975_v26  ;;  %v4442_v29 = vpop.f32.mrb[13].mxu0 }
 0x892   :  { %4452 = vmatmul.mubr.msk.f32.vlgmr.msra.gmra.mrb[14].mxu0 %vm63_vm1, %v982_v28  ;;  %v983_v30 = vsub.f32 %v826_v14, %v982_v28 }
 0x893   :  { %4471 = vmatpush3.msk.msra.mxu0 %vm141_vm2, %v5030_v9  ;;  %4472 = vmatprep.mubr.msk.f32.mxu0 %vm4931_vm0, %v4932_v4 }
 0x894   :  { %4475 = vmatprep.subr.mxu0 %v4932_v4  ;;  %4905 = vtanh.f32 %v983_v30  ;;  %v1354_v50 = vmul.f32 0.9, %v983_v30 }
 0x89e   :  { %v4906_v36 = vpop.eup %4905 }
 0x965   :  { %v1053_v31 = vpop.f32.mrb[14].mxu0 }
 0x966   :  { %v1057_v32 = vmul.f32 %v1053_v31, %v672_v62  ;;  %v4453_v35 = vpop.f32.mrb[15].mxu0 }
 0x968   :  { %4457 = vmatmul.mubr.msk.f32.vlgmr.msra.gmra.mrb[10].mxu1 %vm216_vm4, %v1057_v32 }
 0x969   :  { %4794 = vmatpush3.bf16.msra.mxu1 %v5010_v5  ;;  %4467 = vmatprep.mubr.msk.f32.mxu1 %vm4931_vm0, %v4932_v4 }
 0x96a   :  { %4795 = vmatprep.subr.bf16.mxu1 %v4930_v0 }
 0x96d   :  { %4797 = vmatpush3.bf16.msra.mxu1 %v5022_v8 }
 0x96e   :  { %4798 = vmatprep.subr.bf16.mxu1 %v4930_v0 }
 0x970   :  { %4468 = vmatmul.mubr.msk.f32.vlgmr.msra.gmra.mrb[12].mxu1 %vm63_vm1, %v4906_v36  ;;  %v4132_v36 = vld [vmem:[%s5524_s0 + $0x6] sm:$0x3] }
 0x971   :  { %4800 = vmatpush3.bf16.msra.mxu1 %v5069_v21  ;;  %4488 = vmatprep.mubr.msk.f32.mxu1 %vm4931_vm0, %v4932_v4 }
 0x972   :  { %4801 = vmatprep.subr.bf16.mxu1 %v4930_v0 }
 0x975   :  { %4803 = vmatpush3.bf16.msra.mxu1 %v5075_v23 }
 0x976   :  { %4507 = vmatprep.subr.mxu1 %v4932_v4 }
 0xa3b   :  { %v1127_v37 = vpop.f32.mrb[10].mxu1 }
 0xa3c   :  { %v1131_v38 = vmul.f32 0.05, %v1127_v37  ;;  %v4458_v39 = vpop.f32.mrb[11].mxu1 }
 0xa3e   :  { %v5218_v40 = vsub.f32 %v5162_v61, %v1131_v38 }
 0xa40   :  { %4473 = vmatmul.mubr.msk.f32.vlgmr.msra.gmra.mrb[16].mxu0 %vm137_vm3, %v5218_v40 }
 0xa41   :  { %4476 = vmatpush3.msra.mxu0 %v5050_v12  ;;  %4477 = vmatprep.mubr.msk.f32.mxu0 %vm4931_vm0, %v4932_v4 }
 0xa42   :  { %4491 = vmatprep.subr.mxu0 %v4932_v4 }
 0xa43   :  { %v1203_v42 = vpop.f32.mrb[12].mxu1 }
 0xa44   :  { %v4469_v43 = vpop.f32.mrb[13].mxu1 }
 0xb13   :  { %v1276_v44 = vpop.f32.mrb[16].mxu0 }
 0xb14   :  { %v1280_v47 = vmul.f32 %v1276_v44, %v1203_v42  ;;  %v4474_v48 = vpop.f32.mrb[17].mxu0 }
 0xb16   :  { %4478 = vmatmul.mubr.msk.f32.vlgmr.msra.gmra.mrb[18].mxu0 %vm216_vm4, %v1280_v47 }
 0xb17   :  { %4492 = vmatpush3.msk.msra.mxu0 %vm141_vm2, %v5092_v33  ;;  %4493 = vmatprep.mubr.msk.f32.mxu0 %vm4931_vm0, %v4932_v4 }
 0xb18   :  { %4804 = vmatprep.subr.bf16.mxu0 %v4930_v0 }
 0xbe9   :  { %v1350_v49 = vpop.f32.mrb[18].mxu0 }
 0xbea   :  { %v1355_v51 = vmul.f32 0.1, %v1350_v49  ;;  %v4479_v52 = vpop.f32.mrb[19].mxu0 }
 0xbec   :  { %v1356_v53 = vadd.f32 %v1355_v51, %v1354_v50 }
 0xbee   :  { %v1357_v54 = vadd.f32 %v1356_v53, %v5083_v27 }
 0xbf0   :  { %4907 = vtanh.f32 %v1357_v54 }
 0xbfa   :  { %v4908_v55 = vpop.eup %4907 }
 0xbfb   :  { %4489 = vmatmul.mubr.msk.f32.vlgmr.msra.gmra.mrb[14].mxu1 %vm63_vm1, %v4908_v55  ;;  %v1510_v61 = vmul.f32 %v4908_v55, %v4908_v55 }
 0xbfc   :  { %4508 = vmatpush3.msra.mxu1 %v5136_v46  ;;  %4509 = vmatprep.mubr.msk.f32.mxu1 %vm4931_vm0, %v4932_v4 }
 0xbfd   :  { %4810 = vmatprep.subr.bf16.mxu1 %v4930_v0  ;;  %v1511_v62 = vsub.f32 1.0, %v1510_v61 }
 0xbff   :  { %v1512_v63 = vmul.f32 0.1, %v1511_v62 }
 0xcce   :  { %v1428_v56 = vpop.f32.mrb[14].mxu1 }
 0xccf   :  { %v1429_v58 = vadd.f32 %v1428_v56, %v5100_v34  ;;  %v4490_v59 = vpop.f32.mrb[15].mxu1 }
 0xcd1   :  { %v1434_v60 = vsub.f32 %v1429_v58, %v4121_v57 }
 0xcd3   :  { %4122 = vst.msk [vmem:[%s5525_s12 + $0x4] sm:$0x3] %vm370_vm5, %v1434_v60  ;;  %4494 = vmatmul.mubr.msk.f32.vlgmr.msra.gmra.mrb[20].mxu0 %vm137_vm3, %v1434_v60 }
 0xcd4   :  { %4806 = vmatpush3.bf16.msra.mxu0 %v5112_v41  ;;  %4504 = vmatprep.mubr.msk.f32.mxu0 %vm4931_vm0, %v4932_v4 }
 0xcd5   :  { %4807 = vmatprep.subr.bf16.mxu0 %v4930_v0 }
 0xcd8   :  { %4809 = vmatpush3.bf16.msra.mxu0 %v5129_v45 }
 0xcd9   :  { %4523 = vmatprep.subr.mxu0 %v4932_v4 }
 0xda6   :  { %v1506_v1 = vpop.f32.mrb[20].mxu0 }
 0xda7   :  { %v1513_v2 = vmul.f32 %v1512_v63, %v1506_v1  ;;  %v4495_v3 = vpop.f32.mrb[21].mxu0 }
 0xda9   :  { %4505 = vmatmul.mubr.msk.f32.vlgmr.msra.gmra.mrb[22].mxu0 %vm63_vm1, %v1513_v2  ;;  %v1514_v6 = vsub.f32 %v1357_v54, %v1513_v2 }
 0xdaa   :  { %4524 = vmatpush3.msk.msra.mxu0 %vm141_vm2, %v5030_v9  ;;  %4525 = vmatprep.mubr.msk.f32.mxu0 %vm4931_vm0, %v4932_v4 }
 0xdab   :  { %4528 = vmatprep.subr.mxu0 %v4932_v4  ;;  %4909 = vtanh.f32 %v1514_v6  ;;  %v1885_v26 = vmul.f32 0.9, %v1514_v6 }
 0xdb5   :  { %v4910_v13 = vpop.eup %4909 }
 0xe7c   :  { %v1584_v7 = vpop.f32.mrb[22].mxu0 }
 0xe7d   :  { %v1588_v10 = vmul.f32 %v1584_v7, %v1203_v42  ;;  %v4506_v11 = vpop.f32.mrb[23].mxu0 }
 0xe7f   :  { %4510 = vmatmul.mubr.msk.f32.vlgmr.msra.gmra.mrb[16].mxu1 %vm216_vm4, %v1588_v10 }
 0xe80   :  { %4812 = vmatpush3.bf16.msra.mxu1 %v5010_v5  ;;  %4520 = vmatprep.mubr.msk.f32.mxu1 %vm4931_vm0, %v4932_v4 }
 0xe81   :  { %4813 = vmatprep.subr.bf16.mxu1 %v4930_v0 }
 0xe84   :  { %4815 = vmatpush3.bf16.msra.mxu1 %v5022_v8 }
 0xe85   :  { %4816 = vmatprep.subr.bf16.mxu1 %v4930_v0 }
 0xe87   :  { %4521 = vmatmul.mubr.msk.f32.vlgmr.msra.gmra.mrb[18].mxu1 %vm63_vm1, %v4910_v13  ;;  %v4143_v13 = vld [vmem:[%s5524_s0 + $0x8] sm:$0x3] }
 0xe88   :  { %4818 = vmatpush3.bf16.msra.mxu1 %v5069_v21  ;;  %4541 = vmatprep.mubr.msk.f32.mxu1 %vm4931_vm0, %v4932_v4 }
 0xe89   :  { %4819 = vmatprep.subr.bf16.mxu1 %v4930_v0 }
 0xe8c   :  { %4821 = vmatpush3.bf16.msra.mxu1 %v5075_v23 }
 0xe8d   :  { %4560 = vmatprep.subr.mxu1 %v4932_v4 }
 0xf52   :  { %v1658_v14 = vpop.f32.mrb[16].mxu1 }
 0xf53   :  { %v1662_v15 = vmul.f32 0.05, %v1658_v14  ;;  %v4511_v16 = vpop.f32.mrb[17].mxu1 }
 0xf55   :  { %v5274_v17 = vsub.f32 %v5218_v40, %v1662_v15 }
 0xf57   :  { %4526 = vmatmul.mubr.msk.f32.vlgmr.msra.gmra.mrb[24].mxu0 %vm137_vm3, %v5274_v17 }
 0xf58   :  { %4529 = vmatpush3.msra.mxu0 %v5050_v12  ;;  %4530 = vmatprep.mubr.msk.f32.mxu0 %vm4931_vm0, %v4932_v4 }
 0xf59   :  { %4544 = vmatprep.subr.mxu0 %v4932_v4 }
 0xf5a   :  { %v1734_v18 = vpop.f32.mrb[18].mxu1 }
 0xf5b   :  { %v4522_v19 = vpop.f32.mrb[19].mxu1 }
0x102a   :  { %v1807_v20 = vpop.f32.mrb[24].mxu0 }
0x102b   :  { %v1811_v22 = vmul.f32 %v1807_v20, %v1734_v18  ;;  %v4527_v24 = vpop.f32.mrb[25].mxu0 }
0x102d   :  { %4531 = vmatmul.mubr.msk.f32.vlgmr.msra.gmra.mrb[26].mxu0 %vm216_vm4, %v1811_v22 }
0x102e   :  { %4545 = vmatpush3.msk.msra.mxu0 %vm141_vm2, %v5092_v33  ;;  %4546 = vmatprep.mubr.msk.f32.mxu0 %vm4931_vm0, %v4932_v4 }
0x102f   :  { %4822 = vmatprep.subr.bf16.mxu0 %v4930_v0 }
0x1100   :  { %v1881_v25 = vpop.f32.mrb[26].mxu0 }
0x1101   :  { %v1886_v28 = vmul.f32 0.1, %v1881_v25  ;;  %v4532_v29 = vpop.f32.mrb[27].mxu0 }
0x1103   :  { %v1887_v30 = vadd.f32 %v1886_v28, %v1885_v26 }
0x1105   :  { %v1888_v31 = vadd.f32 %v1887_v30, %v5083_v27 }
0x1107   :  { %4911 = vtanh.f32 %v1888_v31 }
0x1111   :  { %v4912_v32 = vpop.eup %4911 }
0x1112   :  { %4542 = vmatmul.mubr.msk.f32.vlgmr.msra.gmra.mrb[20].mxu1 %vm63_vm1, %v4912_v32  ;;  %v2041_v40 = vmul.f32 %v4912_v32, %v4912_v32 }
0x1113   :  { %4561 = vmatpush3.msra.mxu1 %v5136_v46  ;;  %4562 = vmatprep.mubr.msk.f32.mxu1 %vm4931_vm0, %v4932_v4 }
0x1114   :  { %4828 = vmatprep.subr.bf16.mxu1 %v4930_v0  ;;  %v2042_v42 = vsub.f32 1.0, %v2041_v40 }
0x1116   :  { %v2043_v43 = vmul.f32 0.1, %v2042_v42 }
0x11e5   :  { %v1959_v35 = vpop.f32.mrb[20].mxu1 }
0x11e6   :  { %v1960_v37 = vadd.f32 %v1959_v35, %v5100_v34  ;;  %v4543_v38 = vpop.f32.mrb[21].mxu1 }
0x11e8   :  { %v1965_v39 = vsub.f32 %v1960_v37, %v4132_v36 }
0x11ea   :  { %4133 = vst.msk [vmem:[%s5525_s12 + $0x6] sm:$0x3] %vm370_vm5, %v1965_v39  ;;  %4547 = vmatmul.mubr.msk.f32.vlgmr.msra.gmra.mrb[28].mxu0 %vm137_vm3, %v1965_v39 }
0x11eb   :  { %4824 = vmatpush3.bf16.msra.mxu0 %v5112_v41  ;;  %4557 = vmatprep.mubr.msk.f32.mxu0 %vm4931_vm0, %v4932_v4 }
0x11ec   :  { %4825 = vmatprep.subr.bf16.mxu0 %v4930_v0 }
0x11ef   :  { %4827 = vmatpush3.bf16.msra.mxu0 %v5129_v45 }
0x11f0   :  { %4576 = vmatprep.subr.mxu0 %v4932_v4 }
0x12bd   :  { %v2037_v44 = vpop.f32.mrb[28].mxu0 }
0x12be   :  { %v2044_v47 = vmul.f32 %v2043_v43, %v2037_v44  ;;  %v4548_v48 = vpop.f32.mrb[29].mxu0 }
0x12c0   :  { %4558 = vmatmul.mubr.msk.f32.vlgmr.msra.gmra.mrb[30].mxu0 %vm63_vm1, %v2044_v47  ;;  %v2045_v49 = vsub.f32 %v1888_v31, %v2044_v47 }
0x12c1   :  { %4577 = vmatpush3.msk.msra.mxu0 %vm141_vm2, %v5030_v9  ;;  %4578 = vmatprep.mubr.msk.f32.mxu0 %vm4931_vm0, %v4932_v4 }
0x12c2   :  { %4581 = vmatprep.subr.mxu0 %v4932_v4  ;;  %4913 = vtanh.f32 %v2045_v49  ;;  %v2416_v1 = vmul.f32 0.9, %v2045_v49 }
0x12cc   :  { %v4914_v53 = vpop.eup %4913 }
0x1393   :  { %v2115_v50 = vpop.f32.mrb[30].mxu0 }
0x1394   :  { %v2119_v51 = vmul.f32 %v2115_v50, %v1734_v18  ;;  %v4559_v52 = vpop.f32.mrb[31].mxu0 }
0x1396   :  { %4563 = vmatmul.mubr.msk.f32.vlgmr.msra.gmra.mrb[22].mxu1 %vm216_vm4, %v2119_v51 }
0x1397   :  { %4830 = vmatpush3.bf16.msra.mxu1 %v5010_v5  ;;  %4573 = vmatprep.mubr.msk.f32.mxu1 %vm4931_vm0, %v4932_v4 }
0x1398   :  { %4831 = vmatprep.subr.bf16.mxu1 %v4930_v0 }
0x139b   :  { %4833 = vmatpush3.bf16.msra.mxu1 %v5022_v8 }
0x139c   :  { %4834 = vmatprep.subr.bf16.mxu1 %v4930_v0 }
0x139e   :  { %4574 = vmatmul.mubr.msk.f32.vlgmr.msra.gmra.mrb[24].mxu1 %vm63_vm1, %v4914_v53  ;;  %v4154_v53 = vld [vmem:[%s5524_s0 + $0xa] sm:$0x3] }
0x139f   :  { %4836 = vmatpush3.bf16.msra.mxu1 %v5069_v21  ;;  %4594 = vmatprep.mubr.msk.f32.mxu1 %vm4931_vm0, %v4932_v4 }
0x13a0   :  { %4837 = vmatprep.subr.bf16.mxu1 %v4930_v0 }
0x13a3   :  { %4839 = vmatpush3.bf16.msra.mxu1 %v5075_v23 }
0x13a4   :  { %4613 = vmatprep.subr.mxu1 %v4932_v4 }
0x1469   :  { %v2189_v54 = vpop.f32.mrb[22].mxu1 }
0x146a   :  { %v2193_v55 = vmul.f32 0.05, %v2189_v54  ;;  %v4564_v56 = vpop.f32.mrb[23].mxu1 }
0x146c   :  { %v5330_v57 = vsub.f32 %v5274_v17, %v2193_v55 }
0x146e   :  { %4579 = vmatmul.mubr.msk.f32.vlgmr.msra.gmra.mrb[32].mxu0 %vm137_vm3, %v5330_v57 }
0x146f   :  { %4582 = vmatpush3.msra.mxu0 %v5050_v12  ;;  %4583 = vmatprep.mubr.msk.f32.mxu0 %vm4931_vm0, %v4932_v4 }
0x1470   :  { %4597 = vmatprep.subr.mxu0 %v4932_v4 }
0x1471   :  { %v2265_v58 = vpop.f32.mrb[24].mxu1 }
0x1472   :  { %v4575_v59 = vpop.f32.mrb[25].mxu1 }
0x1541   :  { %v2338_v60 = vpop.f32.mrb[32].mxu0 }
0x1542   :  { %v2342_v61 = vmul.f32 %v2338_v60, %v2265_v58  ;;  %v4580_v62 = vpop.f32.mrb[33].mxu0 }
0x1544   :  { %4584 = vmatmul.mubr.msk.f32.vlgmr.msra.gmra.mrb[34].mxu0 %vm216_vm4, %v2342_v61 }
0x1545   :  { %4598 = vmatpush3.msk.msra.mxu0 %vm141_vm2, %v5092_v33  ;;  %4599 = vmatprep.mubr.msk.f32.mxu0 %vm4931_vm0, %v4932_v4 }
0x1546   :  { %4840 = vmatprep.subr.bf16.mxu0 %v4930_v0 }
0x1617   :  { %v2412_v63 = vpop.f32.mrb[34].mxu0 }
0x1618   :  { %v2417_v2 = vmul.f32 0.1, %v2412_v63  ;;  %v4585_v3 = vpop.f32.mrb[35].mxu0 }
0x161a   :  { %v2418_v6 = vadd.f32 %v2417_v2, %v2416_v1 }
0x161c   :  { %v2419_v7 = vadd.f32 %v2418_v6, %v5083_v27 }
0x161e   :  { %4915 = vtanh.f32 %v2419_v7 }
0x1628   :  { %v4916_v10 = vpop.eup %4915 }
0x1629   :  { %4595 = vmatmul.mubr.msk.f32.vlgmr.msra.gmra.mrb[26].mxu1 %vm63_vm1, %v4916_v10  ;;  %v2572_v17 = vmul.f32 %v4916_v10, %v4916_v10 }
0x162a   :  { %4614 = vmatpush3.msra.mxu1 %v5136_v46  ;;  %4615 = vmatprep.mubr.msk.f32.mxu1 %vm4931_vm0, %v4932_v4 }
0x162b   :  { %4846 = vmatprep.subr.bf16.mxu1 %v4930_v0  ;;  %v2573_v18 = vsub.f32 1.0, %v2572_v17 }
0x162d   :  { %v2574_v19 = vmul.f32 0.1, %v2573_v18 }
0x16fc   :  { %v2490_v11 = vpop.f32.mrb[26].mxu1 }
0x16fd   :  { %v2491_v14 = vadd.f32 %v2490_v11, %v5100_v34  ;;  %v4596_v15 = vpop.f32.mrb[27].mxu1 }
0x16ff   :  { %v2496_v16 = vsub.f32 %v2491_v14, %v4143_v13 }
0x1701   :  { %4144 = vst.msk [vmem:[%s5525_s12 + $0x8] sm:$0x3] %vm370_vm5, %v2496_v16  ;;  %4600 = vmatmul.mubr.msk.f32.vlgmr.msra.gmra.mrb[36].mxu0 %vm137_vm3, %v2496_v16 }
0x1702   :  { %4842 = vmatpush3.bf16.msra.mxu0 %v5112_v41  ;;  %4610 = vmatprep.mubr.msk.f32.mxu0 %vm4931_vm0, %v4932_v4 }
0x1703   :  { %4843 = vmatprep.subr.bf16.mxu0 %v4930_v0 }
0x1706   :  { %4845 = vmatpush3.bf16.msra.mxu0 %v5129_v45 }
0x1707   :  { %4629 = vmatprep.subr.mxu0 %v4932_v4 }
0x17d4   :  { %v2568_v20 = vpop.f32.mrb[36].mxu0 }
0x17d5   :  { %v2575_v22 = vmul.f32 %v2574_v19, %v2568_v20  ;;  %v4601_v24 = vpop.f32.mrb[37].mxu0 }
0x17d7   :  { %4611 = vmatmul.mubr.msk.f32.vlgmr.msra.gmra.mrb[38].mxu0 %vm63_vm1, %v2575_v22  ;;  %v2576_v25 = vsub.f32 %v2419_v7, %v2575_v22 }
0x17d8   :  { %4630 = vmatpush3.msk.msra.mxu0 %vm141_vm2, %v5030_v9  ;;  %4631 = vmatprep.mubr.msk.f32.mxu0 %vm4931_vm0, %v4932_v4 }
0x17d9   :  { %4634 = vmatprep.subr.mxu0 %v4932_v4  ;;  %4917 = vtanh.f32 %v2576_v25  ;;  %v2947_v44 = vmul.f32 0.9, %v2576_v25 }
0x17e3   :  { %v4918_v30 = vpop.eup %4917 }
0x18aa   :  { %v2646_v26 = vpop.f32.mrb[38].mxu0 }
0x18ab   :  { %v2650_v28 = vmul.f32 %v2646_v26, %v2265_v58  ;;  %v4612_v29 = vpop.f32.mrb[39].mxu0 }
0x18ad   :  { %4616 = vmatmul.mubr.msk.f32.vlgmr.msra.gmra.mrb[28].mxu1 %vm216_vm4, %v2650_v28  ;;  %v4165_v28 = vld [vmem:[%s5524_s0 + $0xc] sm:$0x3] }
0x18ae   :  { %4848 = vmatpush3.bf16.msra.mxu1 %v5010_v5  ;;  %4626 = vmatprep.mubr.msk.f32.mxu1 %vm4931_vm0, %v4932_v4 }
0x18af   :  { %4849 = vmatprep.subr.bf16.mxu1 %v4930_v0 }
0x18b2   :  { %4851 = vmatpush3.bf16.msra.mxu1 %v5022_v8 }
0x18b3   :  { %4852 = vmatprep.subr.bf16.mxu1 %v4930_v0 }
0x18b5   :  { %4627 = vmatmul.mubr.msk.f32.vlgmr.msra.gmra.mrb[30].mxu1 %vm63_vm1, %v4918_v30 }
0x18b6   :  { %4854 = vmatpush3.bf16.msra.mxu1 %v5069_v21  ;;  %4647 = vmatprep.mubr.msk.f32.mxu1 %vm4931_vm0, %v4932_v4 }
0x18b7   :  { %4855 = vmatprep.subr.bf16.mxu1 %v4930_v0 }
0x18ba   :  { %4857 = vmatpush3.bf16.msra.mxu1 %v5075_v23 }
0x18bb   :  { %4666 = vmatprep.subr.mxu1 %v4932_v4 }
0x1980   :  { %v2720_v31 = vpop.f32.mrb[28].mxu1 }
0x1981   :  { %v2724_v32 = vmul.f32 0.05, %v2720_v31  ;;  %v4617_v35 = vpop.f32.mrb[29].mxu1 }
0x1983   :  { %v5386_v36 = vsub.f32 %v5330_v57, %v2724_v32 }
0x1985   :  { %4632 = vmatmul.mubr.msk.f32.vlgmr.msra.gmra.mrb[40].mxu0 %vm137_vm3, %v5386_v36 }
0x1986   :  { %4635 = vmatpush3.msra.mxu0 %v5050_v12  ;;  %4636 = vmatprep.mubr.msk.f32.mxu0 %vm4931_vm0, %v4932_v4 }
0x1987   :  { %4650 = vmatprep.subr.mxu0 %v4932_v4 }
0x1988   :  { %v2796_v37 = vpop.f32.mrb[30].mxu1 }
0x1989   :  { %v4628_v38 = vpop.f32.mrb[31].mxu1 }
0x1a58   :  { %v2869_v39 = vpop.f32.mrb[40].mxu0 }
0x1a59   :  { %v2873_v40 = vmul.f32 %v2869_v39, %v2796_v37  ;;  %v4633_v42 = vpop.f32.mrb[41].mxu0 }
0x1a5b   :  { %4637 = vmatmul.mubr.msk.f32.vlgmr.msra.gmra.mrb[42].mxu0 %vm216_vm4, %v2873_v40 }
0x1a5c   :  { %4651 = vmatpush3.msk.msra.mxu0 %vm141_vm2, %v5092_v33  ;;  %4652 = vmatprep.mubr.msk.f32.mxu0 %vm4931_vm0, %v4932_v4 }
0x1a5d   :  { %4858 = vmatprep.subr.bf16.mxu0 %v4930_v0 }
0x1b2e   :  { %v2943_v43 = vpop.f32.mrb[42].mxu0 }
0x1b2f   :  { %v2948_v47 = vmul.f32 0.1, %v2943_v43  ;;  %v4638_v48 = vpop.f32.mrb[43].mxu0 }
0x1b31   :  { %v2949_v49 = vadd.f32 %v2948_v47, %v2947_v44 }
0x1b33   :  { %v2950_v50 = vadd.f32 %v2949_v49, %v5083_v27 }
0x1b35   :  { %4919 = vtanh.f32 %v2950_v50 }
0x1b3f   :  { %v4920_v51 = vpop.eup %4919 }
0x1b40   :  { %4648 = vmatmul.mubr.msk.f32.vlgmr.msra.gmra.mrb[32].mxu1 %vm63_vm1, %v4920_v51  ;;  %v3103_v57 = vmul.f32 %v4920_v51, %v4920_v51 }
0x1b41   :  { %4667 = vmatpush3.msra.mxu1 %v5136_v46  ;;  %4668 = vmatprep.mubr.msk.f32.mxu1 %vm4931_vm0, %v4932_v4 }
0x1b42   :  { %4864 = vmatprep.subr.bf16.mxu1 %v4930_v0  ;;  %v3104_v58 = vsub.f32 1.0, %v3103_v57 }
0x1b44   :  { %v3105_v59 = vmul.f32 0.1, %v3104_v58 }
0x1c13   :  { %v3021_v52 = vpop.f32.mrb[32].mxu1 }
0x1c14   :  { %v3022_v54 = vadd.f32 %v3021_v52, %v5100_v34  ;;  %v4649_v55 = vpop.f32.mrb[33].mxu1 }
0x1c16   :  { %v3027_v56 = vsub.f32 %v3022_v54, %v4154_v53 }
0x1c18   :  { %4155 = vst.msk [vmem:[%s5525_s12 + $0xa] sm:$0x3] %vm370_vm5, %v3027_v56  ;;  %4653 = vmatmul.mubr.msk.f32.vlgmr.msra.gmra.mrb[44].mxu0 %vm137_vm3, %v3027_v56 }
0x1c19   :  { %4860 = vmatpush3.bf16.msra.mxu0 %v5112_v41  ;;  %4663 = vmatprep.mubr.msk.f32.mxu0 %vm4931_vm0, %v4932_v4 }
0x1c1a   :  { %4861 = vmatprep.subr.bf16.mxu0 %v4930_v0 }
0x1c1d   :  { %4863 = vmatpush3.bf16.msra.mxu0 %v5129_v45 }
0x1c1e   :  { %4682 = vmatprep.subr.mxu0 %v4932_v4 }
0x1ceb   :  { %v3099_v60 = vpop.f32.mrb[44].mxu0 }
0x1cec   :  { %v3106_v61 = vmul.f32 %v3105_v59, %v3099_v60  ;;  %v4654_v62 = vpop.f32.mrb[45].mxu0 }
0x1cee   :  { %4664 = vmatmul.mubr.msk.f32.vlgmr.msra.gmra.mrb[46].mxu0 %vm63_vm1, %v3106_v61  ;;  %v3107_v63 = vsub.f32 %v2950_v50, %v3106_v61 }
0x1cef   :  { %4683 = vmatpush3.msk.msra.mxu0 %vm141_vm2, %v5030_v9  ;;  %4684 = vmatprep.mubr.msk.f32.mxu0 %vm4931_vm0, %v4932_v4 }
0x1cf0   :  { %4687 = vmatprep.subr.mxu0 %v4932_v4  ;;  %4921 = vtanh.f32 %v3107_v63  ;;  %v3478_v19 = vmul.f32 0.9, %v3107_v63 }
0x1cfa   :  { %v4922_v6 = vpop.eup %4921 }
0x1dc1   :  { %v3177_v1 = vpop.f32.mrb[46].mxu0 }
0x1dc2   :  { %v3181_v2 = vmul.f32 %v3177_v1, %v2796_v37  ;;  %v4665_v3 = vpop.f32.mrb[47].mxu0 }
0x1dc4   :  { %4669 = vmatmul.mubr.msk.f32.vlgmr.msra.gmra.mrb[34].mxu1 %vm216_vm4, %v3181_v2 }
0x1dc5   :  { %4866 = vmatpush3.bf16.msra.mxu1 %v5010_v5  ;;  %4679 = vmatprep.mubr.msk.f32.mxu1 %vm4931_vm0, %v4932_v4 }
0x1dc6   :  { %4867 = vmatprep.subr.bf16.mxu1 %v4930_v0 }
0x1dc9   :  { %4869 = vmatpush3.bf16.msra.mxu1 %v5022_v8 }
0x1dca   :  { %4870 = vmatprep.subr.bf16.mxu1 %v4930_v0 }
0x1dcc   :  { %4680 = vmatmul.mubr.msk.f32.vlgmr.msra.gmra.mrb[36].mxu1 %vm63_vm1, %v4922_v6 }
0x1dcd   :  { %4872 = vmatpush3.bf16.msra.mxu1 %v5069_v21  ;;  %4700 = vmatprep.mubr.msk.f32.mxu1 %vm4931_vm0, %v4932_v4 }
0x1dce   :  { %4873 = vmatprep.subr.bf16.mxu1 %v4930_v0 }
0x1dd1   :  { %4875 = vmatpush3.bf16.msra.mxu1 %v5075_v23 }
0x1dd2   :  { %4719 = vmatprep.subr.mxu1 %v4932_v4 }
0x1e97   :  { %v3251_v7 = vpop.f32.mrb[34].mxu1 }
0x1e98   :  { %v3255_v10 = vmul.f32 0.05, %v3251_v7  ;;  %v4670_v11 = vpop.f32.mrb[35].mxu1 }
0x1e9a   :  { %v5442_v13 = vsub.f32 %v5386_v36, %v3255_v10 }
0x1e9c   :  { %4685 = vmatmul.mubr.msk.f32.vlgmr.msra.gmra.mrb[48].mxu0 %vm137_vm3, %v5442_v13 }
0x1e9d   :  { %4688 = vmatpush3.msra.mxu0 %v5050_v12  ;;  %4689 = vmatprep.mubr.msk.f32.mxu0 %vm4931_vm0, %v4932_v4 }
0x1e9e   :  { %4703 = vmatprep.subr.mxu0 %v4932_v4 }
0x1e9f   :  { %v3327_v14 = vpop.f32.mrb[36].mxu1 }
0x1ea0   :  { %v4681_v15 = vpop.f32.mrb[37].mxu1 }
0x1f6f   :  { %v3400_v16 = vpop.f32.mrb[48].mxu0 }
0x1f70   :  { %v3404_v17 = vmul.f32 %v3400_v16, %v3327_v14  ;;  %v4686_v18 = vpop.f32.mrb[49].mxu0 }
0x1f72   :  { %4690 = vmatmul.mubr.msk.f32.vlgmr.msra.gmra.mrb[50].mxu0 %vm216_vm4, %v3404_v17 }
0x1f73   :  { %4704 = vmatpush3.msk.msra.mxu0 %vm141_vm2, %v5092_v33  ;;  %4705 = vmatprep.mubr.msk.f32.mxu0 %vm4931_vm0, %v4932_v4 }
0x1f74   :  { %4876 = vmatprep.subr.bf16.mxu0 %v4930_v0 }
0x2045   :  { %v3474_v12 = vpop.f32.mrb[50].mxu0 }
0x2046   :  { %v3479_v20 = vmul.f32 0.1, %v3474_v12  ;;  %v4691_v22 = vpop.f32.mrb[51].mxu0 }
0x2048   :  { %v3480_v24 = vadd.f32 %v3479_v20, %v3478_v19 }
0x204a   :  { %v3481_v25 = vadd.f32 %v3480_v24, %v5083_v27 }
0x204c   :  { %4923 = vtanh.f32 %v3481_v25 }
0x2056   :  { %v4924_v26 = vpop.eup %4923 }
0x2057   :  { %4701 = vmatmul.mubr.msk.f32.vlgmr.msra.gmra.mrb[38].mxu1 %vm63_vm1, %v4924_v26 }
0x2058   :  { %4720 = vmatpush3.msra.mxu1 %v5136_v46  ;;  %4721 = vmatprep.mubr.msk.f32.mxu1 %vm4931_vm0, %v4932_v4  ;;  %v3634_v46 = vmul.f32 %v4924_v26, %v4924_v26 }
0x2059   :  { %4882 = vmatprep.subr.bf16.mxu1 %v4930_v0 }
0x205a   :  { %v3635_v32 = vsub.f32 1.0, %v3634_v46 }
0x205c   :  { %v3636_v35 = vmul.f32 0.1, %v3635_v32 }
0x212a   :  { %v3552_v33 = vpop.f32.mrb[38].mxu1 }
0x212b   :  { %v3553_v29 = vadd.f32 %v3552_v33, %v5100_v34  ;;  %v4702_v30 = vpop.f32.mrb[39].mxu1 }
0x212d   :  { %v3558_v31 = vsub.f32 %v3553_v29, %v4165_v28 }
0x212f   :  { %4166 = vst.msk [vmem:[%s5525_s12 + $0xc] sm:$0x3] %vm370_vm5, %v3558_v31  ;;  %4706 = vmatmul.mubr.msk.f32.vlgmr.msra.gmra.mrb[52].mxu0 %vm137_vm3, %v3558_v31 }
0x2130   :  { %4878 = vmatpush3.bf16.msra.mxu0 %v5112_v41  ;;  %4716 = vmatprep.mubr.msk.f32.mxu0 %vm4931_vm0, %v4932_v4 }
0x2131   :  { %4879 = vmatprep.subr.bf16.mxu0 %v4930_v0 }
0x2134   :  { %4881 = vmatpush3.bf16.msra.mxu0 %v5129_v45 }
0x2135   :  { %4735 = vmatprep.subr.mxu0 %v4932_v4 }
0x2202   :  { %v3630_v36 = vpop.f32.mrb[52].mxu0 }
0x2203   :  { %v3637_v37 = vmul.f32 %v3636_v35, %v3630_v36  ;;  %v4707_v38 = vpop.f32.mrb[53].mxu0 }
0x2205   :  { %4717 = vmatmul.mubr.msk.f32.vlgmr.msra.gmra.mrb[54].mxu0 %vm63_vm1, %v3637_v37  ;;  %v3638_v41 = vsub.f32 %v3481_v25, %v3637_v37 }
0x2206   :  { %4736 = vmatpush3.msk.msra.mxu0 %vm141_vm2, %v5030_v9  ;;  %4737 = vmatprep.mubr.msk.f32.mxu0 %vm4931_vm0, %v4932_v4 }
0x2207   :  { %4740 = vmatprep.subr.mxu0 %v4932_v4  ;;  %4925 = vtanh.f32 %v3638_v41  ;;  %v4009_v50 = vmul.f32 0.9, %v3638_v41 }
0x2211   :  { %v4926_v9 = vpop.eup %4925 }
0x22d8   :  { %v3708_v45 = vpop.f32.mrb[54].mxu0 }
0x22d9   :  { %v3712_v39 = vmul.f32 %v3708_v45, %v3327_v14  ;;  %v4718_v40 = vpop.f32.mrb[55].mxu0 }
0x22db   :  { %4722 = vmatmul.mubr.msk.f32.vlgmr.msra.gmra.mrb[40].mxu1 %vm216_vm4, %v3712_v39 }
0x22dc   :  { %4884 = vmatpush3.bf16.msra.mxu1 %v5010_v5  ;;  %4732 = vmatprep.mubr.msk.f32.mxu1 %vm4931_vm0, %v4932_v4 }
0x22dd   :  { %4885 = vmatprep.subr.bf16.mxu1 %v4930_v0 }
0x22e0   :  { %4887 = vmatpush3.bf16.msra.mxu1 %v5022_v8  ;;  %v4929_v8 = vld [vmem:[%s5518_s7] sm:$0xff] }
0x22e1   :  { %4888 = vmatprep.subr.bf16.mxu1 %v4930_v0 }
0x22e3   :  { %4733 = vmatmul.mubr.msk.f32.vlgmr.msra.gmra.mrb[42].mxu1 %vm63_vm1, %v4926_v9 }
0x22e4   :  { %4890 = vmatpush3.bf16.msra.mxu1 %v5069_v21  ;;  %4753 = vmatprep.mubr.msk.f32.mxu1 %vm4931_vm0, %v4932_v4 }
0x22e5   :  { %4891 = vmatprep.subr.bf16.mxu1 %v4930_v0 }
0x22e8   :  { %4893 = vmatpush3.bf16.msra.mxu1 %v5075_v23 }
0x23ae   :  { %v3782_v5 = vpop.f32.mrb[40].mxu1 }
0x23af   :  { %v3786_v42 = vmul.f32 0.05, %v3782_v5  ;;  %v4723_v43 = vpop.f32.mrb[41].mxu1 }
0x23b1   :  { %v3787_v44 = vsub.f32 %v5442_v13, %v3786_v42 }
0x23b3   :  { %4738 = vmatmul.mubr.msk.f32.vlgmr.msra.gmra.mrb[56].mxu0 %vm137_vm3, %v3787_v44 }
0x23b4   :  { %4741 = vmatpush3.msra.mxu0 %v4929_v8  ;;  %4742 = vmatprep.mubr.msk.f32.mxu0 %vm4931_vm0, %v4932_v4  ;;  %v4176_v4 = vld [vmem:[%s5524_s0 + $0xe] sm:$0x3] }
0x23b6   :  { %v3858_v21 = vpop.f32.mrb[42].mxu1 }
0x23b7   :  { %v4734_v47 = vpop.f32.mrb[43].mxu1 }
0x2486   :  { %v3931_v0 = vpop.f32.mrb[56].mxu0 }
0x2487   :  { %v3935_v48 = vmul.f32 %v3931_v0, %v3858_v21  ;;  %v4739_v23 = vpop.f32.mrb[57].mxu0 }
0x2489   :  { %4743 = vmatmul.mubr.msk.f32.vlgmr.msra.gmra.mrb[58].mxu0 %vm216_vm4, %v3935_v48 }
0x255c   :  { %v4005_v49 = vpop.f32.mrb[58].mxu0 }
0x255d   :  { %v4010_v51 = vmul.f32 0.1, %v4005_v49  ;;  %v4744_v52 = vpop.f32.mrb[59].mxu0 }
0x255f   :  { %v4011_v53 = vadd.f32 %v4010_v51, %v4009_v50 }
0x2561   :  { %v4012_v54 = vadd.f32 %v4011_v53, %v5083_v27 }
0x2563   :  { %4927 = vtanh.f32 %v4012_v54 }
0x256d   :  { %v4928_v55 = vpop.eup %4927 }
0x256e   :  { %4754 = vmatmul.mubr.msk.f32.vlgmr.msra.gmra.mrb[44].mxu1 %vm63_vm1, %v4928_v55 }
0x2641   :  { %v4083_v56 = vpop.f32.mrb[44].mxu1 }
0x2642   :  { %v4084_v57 = vadd.f32 %v4083_v56, %v5100_v34  ;;  %v4755_v58 = vpop.f32.mrb[45].mxu1 }
0x2644   :  { %v4089_v59 = vsub.f32 %v4084_v57, %v4176_v4 }
0x2646   :  { %4177 = vst.msk [vmem:[%s5525_s12 + $0xe] sm:$0x3] %vm370_vm5, %v4089_v59 }

</bundles_post_ra>
